<compile_context>
chip_gen: v5e
topology: v5e:2x2
jax: 0.10.0
libtpu: 0.0.40
codegen_flags: <defaults>
</compile_context>

<pallas_src>
import functools
import math

import jax
import jax.numpy as jnp
from jax.experimental import pallas as pl
from jax.experimental.pallas import tpu as pltpu

# ----------------------------- small BERT config -----------------------------
VOCAB = 100
MAX_POS = 32
TYPE_VOCAB = 2
HIDDEN = 32
NUM_HEADS = 4
HEAD_DIM = HIDDEN // NUM_HEADS
INTERMEDIATE = 64
NUM_LAYERS = 2
LN_EPS = 1e-12  # HF BERT LayerNorm eps


# ------------------------------ in-kernel helpers ------------------------------
def _erf_approx(x):
    # Abramowitz & Stegun 7.1.26, |err| < 1.5e-7 (avoids relying on an erf
    # lowering rule inside Mosaic).
    a1, a2, a3, a4, a5 = 0.254829592, -0.284496736, 1.421413741, -1.453152027, 1.061405429
    p = 0.3275911
    sgn = jnp.where(x >= 0.0, 1.0, -1.0)
    ax = jnp.abs(x)
    t = 1.0 / (1.0 + p * ax)
    poly = ((((a5 * t + a4) * t + a3) * t + a2) * t + a1) * t
    return sgn * (1.0 - poly * jnp.exp(-ax * ax))


def _gelu_erf(x):
    # exact (erf-based) GELU as in bert-base-uncased ("gelu")
    return 0.5 * x * (1.0 + _erf_approx(x * (1.0 / math.sqrt(2.0))))


def _layernorm(v, g, b):
    mu = jnp.mean(v, axis=-1, keepdims=True)
    var = jnp.mean(jnp.square(v - mu), axis=-1, keepdims=True)
    return (v - mu) * jax.lax.rsqrt(var + LN_EPS) * g + b


# -------------------------- fully fused forward kernel --------------------------
def _bert_fused_kernel(
    tok_ref, seg_ref, pos_ref, mask_ref,
    word_emb_ref, type_emb_ref, pos_emb_ref,
    emb_ln_g_ref, emb_ln_b_ref,
    wqkv_ref, bqkv_ref, wo_ref, bo_ref, ln1_g_ref, ln1_b_ref,
    w1_ref, b1_ref, w2_ref, b2_ref, ln2_g_ref, ln2_b_ref,
    o_ref, *, num_heads):
    m = tok_ref.shape[0]                      # B*S
    bsz, _, seq = mask_ref.shape              # (B, 1, S)
    vocab, hidden = word_emb_ref.shape
    max_pos = pos_emb_ref.shape[0]
    head_dim = hidden // num_heads
    num_layers = wqkv_ref.shape[0]
    scale = 1.0 / math.sqrt(head_dim)

    # ------------- embeddings: gather == one-hot @ table (MXU-friendly) -------------
    tok = jnp.broadcast_to(tok_ref[...], (m, vocab))                    # (M, V)
    word_oh = jnp.where(
        tok == jax.lax.broadcasted_iota(jnp.int32, (m, vocab), 1), 1.0, 0.0)
    word = jnp.dot(word_oh, word_emb_ref[...], preferred_element_type=jnp.float32)

    pos = jnp.broadcast_to(pos_ref[...], (m, max_pos))
    pos_oh = jnp.where(
        pos == jax.lax.broadcasted_iota(jnp.int32, (m, max_pos), 1), 1.0, 0.0)
    posv = jnp.dot(pos_oh, pos_emb_ref[...], preferred_element_type=jnp.float32)

    # token_type in {0,1}: exact gather via a 2-row blend (no tiny K=2 matmul)
    t_emb = type_emb_ref[...]                                           # (2, H)
    seg_f = seg_ref[...].astype(jnp.float32)                            # (M, 1)
    row0 = jnp.broadcast_to(t_emb[0:1, :], (m, hidden))
    row1 = jnp.broadcast_to(t_emb[1:2, :], (m, hidden))
    typ = row0 + seg_f * (row1 - row0)

    h = _layernorm(word + posv + typ, emb_ln_g_ref[...], emb_ln_b_ref[...])

    # HF-style extended additive attention mask, (B, 1, S)
    neg_mask = (1.0 - mask_ref[...]) * -10000.0

    # --------------------------- encoder layers (unrolled) ---------------------------
    for l in range(num_layers):
        # fused Q|K|V projection: one (M, H) @ (H, 3H) matmul
        qkv = jnp.dot(h, wqkv_ref[l], preferred_element_type=jnp.float32) + bqkv_ref[l]

        ctx_heads = []
        for hd in range(num_heads):
            q0 = hd * head_dim
            qh = qkv[:, q0:q0 + head_dim].reshape(bsz, seq, head_dim)
            kh = qkv[:, hidden + q0:hidden + q0 + head_dim].reshape(bsz, seq, head_dim)
            vh = qkv[:, 2 * hidden + q0:2 * hidden + q0 + head_dim].reshape(bsz, seq, head_dim)

            # contract on head_dim -> no materialized k.T transpose
            s = jnp.einsum('bqd,bkd->bqk', qh, kh,
                           preferred_element_type=jnp.float32) * scale
            s = s + neg_mask
            s = s - jnp.max(s, axis=-1, keepdims=True)
            p = jnp.exp(s)
            p = p * pl.reciprocal(jnp.sum(p, axis=-1, keepdims=True), approx=True)
            ch = jnp.einsum('bqk,bkd->bqd', p, vh,
                            preferred_element_type=jnp.float32)
            ctx_heads.append(ch.reshape(m, head_dim))
        ctx = jnp.concatenate(ctx_heads, axis=-1)                       # (M, H)

        attn_out = jnp.dot(ctx, wo_ref[l], preferred_element_type=jnp.float32) + bo_ref[l]
        h = _layernorm(attn_out + h, ln1_g_ref[l], ln1_b_ref[l])

        ff = jnp.dot(h, w1_ref[l], preferred_element_type=jnp.float32) + b1_ref[l]
        ff = _gelu_erf(ff)
        ff = jnp.dot(ff, w2_ref[l], preferred_element_type=jnp.float32) + b2_ref[l]
        h = _layernorm(ff + h, ln2_g_ref[l], ln2_b_ref[l])

    # single tiny (B*S, H) store at the end.
    # TODO(synk): on v7x the second TensorCore stays idle; at this problem size
    # a batch-parallel grid split would add more per-step overhead than it saves.
    o_ref[...] = h.astype(o_ref.dtype)


# ------------------------------- parameter init --------------------------------
def init_params(key):
    std = 0.02
    k_emb, k_pos, k_typ, k_layers = jax.random.split(key, 4)
    params = {
        "word_emb": jax.random.normal(k_emb, (VOCAB, HIDDEN), jnp.float32) * std,
        "pos_emb": jax.random.normal(k_pos, (MAX_POS, HIDDEN), jnp.float32) * std,
        "type_emb": jax.random.normal(k_typ, (TYPE_VOCAB, HIDDEN), jnp.float32) * std,
        "emb_ln_g": jnp.ones((HIDDEN,), jnp.float32),
        "emb_ln_b": jnp.zeros((HIDDEN,), jnp.float32),
        "layers": [],
    }
    layer_keys = jax.random.split(k_layers, NUM_LAYERS)
    for lk in layer_keys:
        ks = jax.random.split(lk, 6)
        layer = {
            "wq": jax.random.normal(ks[0], (HIDDEN, HIDDEN), jnp.float32) * std,
            "bq": jnp.zeros((HIDDEN,), jnp.float32),
            "wk": jax.random.normal(ks[1], (HIDDEN, HIDDEN), jnp.float32) * std,
            "bk": jnp.zeros((HIDDEN,), jnp.float32),
            "wv": jax.random.normal(ks[2], (HIDDEN, HIDDEN), jnp.float32) * std,
            "bv": jnp.zeros((HIDDEN,), jnp.float32),
            "wo": jax.random.normal(ks[3], (HIDDEN, HIDDEN), jnp.float32) * std,
            "bo": jnp.zeros((HIDDEN,), jnp.float32),
            "ln1_g": jnp.ones((HIDDEN,), jnp.float32),
            "ln1_b": jnp.zeros((HIDDEN,), jnp.float32),
            "w1": jax.random.normal(ks[4], (HIDDEN, INTERMEDIATE), jnp.float32) * std,
            "b1": jnp.zeros((INTERMEDIATE,), jnp.float32),
            "w2": jax.random.normal(ks[5], (INTERMEDIATE, HIDDEN), jnp.float32) * std,
            "b2": jnp.zeros((HIDDEN,), jnp.float32),
            "ln2_g": jnp.ones((HIDDEN,), jnp.float32),
            "ln2_b": jnp.zeros((HIDDEN,), jnp.float32),
        }
        params["layers"].append(layer)
    return params


def pack_params(params):
    """Stack per-layer weights (Q|K|V fused) so the kernel takes few, resident refs."""
    L = params["layers"]
    packed = {
        "word_emb": params["word_emb"],
        "pos_emb": params["pos_emb"],
        "type_emb": params["type_emb"],
        "emb_ln_g": params["emb_ln_g"].reshape(1, HIDDEN),
        "emb_ln_b": params["emb_ln_b"].reshape(1, HIDDEN),
        "wqkv": jnp.stack([jnp.concatenate([l["wq"], l["wk"], l["wv"]], axis=1) for l in L]),
        "bqkv": jnp.stack([jnp.concatenate([l["bq"], l["bk"], l["bv"]]).reshape(1, 3 * HIDDEN)
                           for l in L]),
        "wo": jnp.stack([l["wo"] for l in L]),
        "bo": jnp.stack([l["bo"].reshape(1, HIDDEN) for l in L]),
        "ln1_g": jnp.stack([l["ln1_g"].reshape(1, HIDDEN) for l in L]),
        "ln1_b": jnp.stack([l["ln1_b"].reshape(1, HIDDEN) for l in L]),
        "w1": jnp.stack([l["w1"] for l in L]),
        "b1": jnp.stack([l["b1"].reshape(1, INTERMEDIATE) for l in L]),
        "w2": jnp.stack([l["w2"] for l in L]),
        "b2": jnp.stack([l["b2"].reshape(1, HIDDEN) for l in L]),
        "ln2_g": jnp.stack([l["ln2_g"].reshape(1, HIDDEN) for l in L]),
        "ln2_b": jnp.stack([l["ln2_b"].reshape(1, HIDDEN) for l in L]),
    }
    return packed


# --------------------------------- forward pass ---------------------------------
def bert_forward(packed, x, segs, mask):
    """x, segs, mask: (B, S) int32.  Returns top_vec: (B, S, HIDDEN) float32."""
    B, S = x.shape
    M = B * S

    tok_flat = x.reshape(M, 1).astype(jnp.int32)
    seg_flat = segs.reshape(M, 1).astype(jnp.int32)
    pos_flat = jnp.tile(jnp.arange(S, dtype=jnp.int32), B).reshape(M, 1)
    mask_f = mask.astype(jnp.float32).reshape(B, 1, S)

    out = pl.pallas_call(
        functools.partial(_bert_fused_kernel, num_heads=NUM_HEADS),
        out_shape=jax.ShapeDtypeStruct((M, HIDDEN), jnp.float32),
        compiler_params=pltpu.CompilerParams(vmem_limit_bytes=32 * 1024 * 1024),
    )(
        tok_flat, seg_flat, pos_flat, mask_f,
        packed["word_emb"], packed["type_emb"], packed["pos_emb"],
        packed["emb_ln_g"], packed["emb_ln_b"],
        packed["wqkv"], packed["bqkv"], packed["wo"], packed["bo"],
        packed["ln1_g"], packed["ln1_b"],
        packed["w1"], packed["b1"], packed["w2"], packed["b2"],
        packed["ln2_g"], packed["ln2_b"],
    )
    return out.reshape(B, S, HIDDEN)  # top_vec


# -------------------------------------- main --------------------------------------
if __name__ == "__main__":
    key = jax.random.PRNGKey(0)
    pkey, xkey = jax.random.split(key)

    params = init_params(pkey)
    packed = pack_params(params)

    B, S = 2, 8
    x = jax.random.randint(xkey, (B, S), 0, VOCAB, dtype=jnp.int32)
    # segments: first half sentence A (0), second half sentence B (1)
    segs = jnp.concatenate(
        [jnp.zeros((B, S // 2), jnp.int32), jnp.ones((B, S // 2), jnp.int32)], axis=1)
    # mask: second example has 2 padding positions at the end
    mask = jnp.array([[1] * S, [1] * (S - 2) + [0] * 2], dtype=jnp.int32)

    fwd = jax.jit(bert_forward)
    top_vec = fwd(packed, x, segs, mask)
    jax.block_until_ready(top_vec)

    assert top_vec.shape == (B, S, HIDDEN)
    assert top_vec.dtype == jnp.float32
    # TODO(synk): dropout layers are identity here (module runs in eval()/no_grad()).
    print("KERNEL_OK")
</pallas_src>

<mosaic_0001>
module attributes {stable_mosaic.version = 11 : i64} {
  func.func @_bert_fused_kernel(%arg0: memref<16x1xi32, #tpu.memory_space<vmem>>, %arg1: memref<16x1xi32, #tpu.memory_space<vmem>>, %arg2: memref<16x1xi32, #tpu.memory_space<vmem>>, %arg3: memref<2x1x8xf32, #tpu.memory_space<vmem>>, %arg4: memref<100x32xf32, #tpu.memory_space<vmem>>, %arg5: memref<2x32xf32, #tpu.memory_space<vmem>>, %arg6: memref<32x32xf32, #tpu.memory_space<vmem>>, %arg7: memref<1x32xf32, #tpu.memory_space<vmem>>, %arg8: memref<1x32xf32, #tpu.memory_space<vmem>>, %arg9: memref<2x32x96xf32, #tpu.memory_space<vmem>>, %arg10: memref<2x1x96xf32, #tpu.memory_space<vmem>>, %arg11: memref<2x32x32xf32, #tpu.memory_space<vmem>>, %arg12: memref<2x1x32xf32, #tpu.memory_space<vmem>>, %arg13: memref<2x1x32xf32, #tpu.memory_space<vmem>>, %arg14: memref<2x1x32xf32, #tpu.memory_space<vmem>>, %arg15: memref<2x32x64xf32, #tpu.memory_space<vmem>>, %arg16: memref<2x1x64xf32, #tpu.memory_space<vmem>>, %arg17: memref<2x64x32xf32, #tpu.memory_space<vmem>>, %arg18: memref<2x1x32xf32, #tpu.memory_space<vmem>>, %arg19: memref<2x1x32xf32, #tpu.memory_space<vmem>>, %arg20: memref<2x1x32xf32, #tpu.memory_space<vmem>>, %arg21: memref<16x32xf32, #tpu.memory_space<vmem>>) attributes {dimension_semantics = [], scalar_prefetch = 0 : i64, scratch_operands = 0 : i64, tpu.core_type = #tpu.core_type<tc>} {
    %c0 = arith.constant 0 : index
    %c0_0 = arith.constant 0 : index
    %0 = vector.load %arg0[%c0, %c0_0] : memref<16x1xi32, #tpu.memory_space<vmem>>, vector<16x1xi32>
    %1 = vector.shape_cast %0 : vector<16x1xi32> to vector<16x1xi32>
    %2 = vector.broadcast %1 : vector<16x1xi32> to vector<16x100xi32>
    %3 = tpu.iota {dimensions = array<i32: 1>} : vector<16x100xi32>
    %4 = arith.cmpi eq, %2, %3 : vector<16x100xi32>
    %cst = arith.constant 1.000000e+00 : f32
    %cst_1 = arith.constant 0.000000e+00 : f32
    %5 = vector.broadcast %cst : f32 to vector<16x100xf32>
    %6 = vector.broadcast %cst_1 : f32 to vector<16x100xf32>
    %7 = arith.select %4, %5, %6 : vector<16x100xi1>, vector<16x100xf32>
    %c0_2 = arith.constant 0 : index
    %c0_3 = arith.constant 0 : index
    %8 = vector.load %arg4[%c0_2, %c0_3] : memref<100x32xf32, #tpu.memory_space<vmem>>, vector<100x32xf32>
    %cst_4 = arith.constant dense<0.000000e+00> : vector<16x32xf32>
    %9 = tpu.matmul %7, %8, %cst_4 {dimension_numbers = #tpu.dot_dimension_numbers<[1], [0], [0], [1], [0, 0, 1, 1], [], []>} : vector<16x100xf32>, vector<100x32xf32>, vector<16x32xf32> -> vector<16x32xf32>
    %c0_5 = arith.constant 0 : index
    %c0_6 = arith.constant 0 : index
    %10 = vector.load %arg2[%c0_5, %c0_6] : memref<16x1xi32, #tpu.memory_space<vmem>>, vector<16x1xi32>
    %11 = vector.shape_cast %10 : vector<16x1xi32> to vector<16x1xi32>
    %12 = vector.broadcast %11 : vector<16x1xi32> to vector<16x32xi32>
    %13 = tpu.iota {dimensions = array<i32: 1>} : vector<16x32xi32>
    %14 = arith.cmpi eq, %12, %13 : vector<16x32xi32>
    %cst_7 = arith.constant 1.000000e+00 : f32
    %cst_8 = arith.constant 0.000000e+00 : f32
    %15 = vector.broadcast %cst_7 : f32 to vector<16x32xf32>
    %16 = vector.broadcast %cst_8 : f32 to vector<16x32xf32>
    %17 = arith.select %14, %15, %16 : vector<16x32xi1>, vector<16x32xf32>
    %c0_9 = arith.constant 0 : index
    %c0_10 = arith.constant 0 : index
    %18 = vector.load %arg6[%c0_9, %c0_10] : memref<32x32xf32, #tpu.memory_space<vmem>>, vector<32x32xf32>
    %cst_11 = arith.constant dense<0.000000e+00> : vector<16x32xf32>
    %19 = tpu.matmul %17, %18, %cst_11 {dimension_numbers = #tpu.dot_dimension_numbers<[1], [0], [0], [1], [0, 0, 1, 1], [], []>} : vector<16x32xf32>, vector<32x32xf32>, vector<16x32xf32> -> vector<16x32xf32>
    %c0_12 = arith.constant 0 : index
    %c0_13 = arith.constant 0 : index
    %20 = vector.load %arg5[%c0_12, %c0_13] : memref<2x32xf32, #tpu.memory_space<vmem>>, vector<2x32xf32>
    %c0_14 = arith.constant 0 : index
    %c0_15 = arith.constant 0 : index
    %21 = vector.load %arg1[%c0_14, %c0_15] : memref<16x1xi32, #tpu.memory_space<vmem>>, vector<16x1xi32>
    %22 = arith.sitofp %21 : vector<16x1xi32> to vector<16x1xf32>
    %23 = vector.extract_strided_slice %20 {offsets = [0, 0], sizes = [1, 32], strides = [1, 1]} : vector<2x32xf32> to vector<1x32xf32>
    %24 = vector.shape_cast %23 : vector<1x32xf32> to vector<1x32xf32>
    %25 = vector.broadcast %24 : vector<1x32xf32> to vector<16x32xf32>
    %26 = vector.extract_strided_slice %20 {offsets = [1, 0], sizes = [1, 32], strides = [1, 1]} : vector<2x32xf32> to vector<1x32xf32>
    %27 = vector.shape_cast %26 : vector<1x32xf32> to vector<1x32xf32>
    %28 = vector.broadcast %27 : vector<1x32xf32> to vector<16x32xf32>
    %29 = arith.subf %28, %25 : vector<16x32xf32>
    %30 = vector.broadcast %22 : vector<16x1xf32> to vector<16x32xf32>
    %31 = arith.mulf %30, %29 : vector<16x32xf32>
    %32 = arith.addf %25, %31 : vector<16x32xf32>
    %33 = arith.addf %9, %19 : vector<16x32xf32>
    %34 = arith.addf %33, %32 : vector<16x32xf32>
    %c0_16 = arith.constant 0 : index
    %c0_17 = arith.constant 0 : index
    %35 = vector.load %arg7[%c0_16, %c0_17] : memref<1x32xf32, #tpu.memory_space<vmem>>, vector<1x32xf32>
    %c0_18 = arith.constant 0 : index
    %c0_19 = arith.constant 0 : index
    %36 = vector.load %arg8[%c0_18, %c0_19] : memref<1x32xf32, #tpu.memory_space<vmem>>, vector<1x32xf32>
    %cst_20 = arith.constant dense<0.000000e+00> : vector<16xf32>
    %37 = vector.multi_reduction <add>, %34, %cst_20 [1] : vector<16x32xf32> to vector<16xf32>
    %38 = vector.shape_cast %37 : vector<16xf32> to vector<16x1xf32>
    %cst_21 = arith.constant 3.200000e+01 : f32
    %39 = vector.broadcast %cst_21 : f32 to vector<16x1xf32>
    %40 = arith.divf %38, %39 : vector<16x1xf32>
    %41 = vector.broadcast %40 : vector<16x1xf32> to vector<16x32xf32>
    %42 = arith.subf %34, %41 : vector<16x32xf32>
    %43 = arith.mulf %42, %42 : vector<16x32xf32>
    %cst_22 = arith.constant dense<0.000000e+00> : vector<16xf32>
    %44 = vector.multi_reduction <add>, %43, %cst_22 [1] : vector<16x32xf32> to vector<16xf32>
    %45 = vector.shape_cast %44 : vector<16xf32> to vector<16x1xf32>
    %cst_23 = arith.constant 3.200000e+01 : f32
    %46 = vector.broadcast %cst_23 : f32 to vector<16x1xf32>
    %47 = arith.divf %45, %46 : vector<16x1xf32>
    %48 = vector.broadcast %40 : vector<16x1xf32> to vector<16x32xf32>
    %49 = arith.subf %34, %48 : vector<16x32xf32>
    %cst_24 = arith.constant 9.99999996E-13 : f32
    %50 = vector.broadcast %cst_24 : f32 to vector<16x1xf32>
    %51 = arith.addf %47, %50 : vector<16x1xf32>
    %52 = math.rsqrt %51 : vector<16x1xf32>
    %53 = vector.broadcast %52 : vector<16x1xf32> to vector<16x32xf32>
    %54 = arith.mulf %49, %53 : vector<16x32xf32>
    %55 = vector.broadcast %35 : vector<1x32xf32> to vector<16x32xf32>
    %56 = arith.mulf %54, %55 : vector<16x32xf32>
    %57 = vector.broadcast %36 : vector<1x32xf32> to vector<16x32xf32>
    %58 = arith.addf %56, %57 : vector<16x32xf32>
    %c0_25 = arith.constant 0 : index
    %c0_26 = arith.constant 0 : index
    %c0_27 = arith.constant 0 : index
    %59 = vector.load %arg3[%c0_25, %c0_26, %c0_27] : memref<2x1x8xf32, #tpu.memory_space<vmem>>, vector<2x1x8xf32>
    %cst_28 = arith.constant 1.000000e+00 : f32
    %60 = vector.broadcast %cst_28 : f32 to vector<2x1x8xf32>
    %61 = arith.subf %60, %59 : vector<2x1x8xf32>
    %cst_29 = arith.constant -1.000000e+04 : f32
    %62 = vector.broadcast %cst_29 : f32 to vector<2x1x8xf32>
    %63 = arith.mulf %61, %62 : vector<2x1x8xf32>
    %c0_30 = arith.constant 0 : index
    %c0_31 = arith.constant 0 : index
    %c0_32 = arith.constant 0 : index
    %64 = vector.load %arg9[%c0_30, %c0_31, %c0_32] : memref<2x32x96xf32, #tpu.memory_space<vmem>>, vector<1x32x96xf32>
    %65 = vector.shape_cast %64 : vector<1x32x96xf32> to vector<32x96xf32>
    %cst_33 = arith.constant dense<0.000000e+00> : vector<16x96xf32>
    %66 = tpu.matmul %58, %65, %cst_33 {dimension_numbers = #tpu.dot_dimension_numbers<[1], [0], [0], [1], [0, 0, 1, 1], [], []>} : vector<16x32xf32>, vector<32x96xf32>, vector<16x96xf32> -> vector<16x96xf32>
    %c0_34 = arith.constant 0 : index
    %c0_35 = arith.constant 0 : index
    %c0_36 = arith.constant 0 : index
    %67 = vector.load %arg10[%c0_34, %c0_35, %c0_36] : memref<2x1x96xf32, #tpu.memory_space<vmem>>, vector<1x1x96xf32>
    %68 = vector.shape_cast %67 : vector<1x1x96xf32> to vector<1x96xf32>
    %69 = vector.broadcast %68 : vector<1x96xf32> to vector<16x96xf32>
    %70 = arith.addf %66, %69 : vector<16x96xf32>
    %71 = vector.extract_strided_slice %70 {offsets = [0, 0], sizes = [16, 8], strides = [1, 1]} : vector<16x96xf32> to vector<16x8xf32>
    %72 = vector.shape_cast %71 : vector<16x8xf32> to vector<2x8x8xf32>
    %73 = vector.extract_strided_slice %70 {offsets = [0, 32], sizes = [16, 8], strides = [1, 1]} : vector<16x96xf32> to vector<16x8xf32>
    %74 = vector.shape_cast %73 : vector<16x8xf32> to vector<2x8x8xf32>
    %75 = vector.extract_strided_slice %70 {offsets = [0, 64], sizes = [16, 8], strides = [1, 1]} : vector<16x96xf32> to vector<16x8xf32>
    %76 = vector.shape_cast %75 : vector<16x8xf32> to vector<2x8x8xf32>
    "tpu.trace_start"() <{level = 10 : i32, message = "bqd,bkd->bqk"}> : () -> ()
    %cst_37 = arith.constant dense<0.000000e+00> : vector<2x8x8xf32>
    %77 = tpu.matmul %72, %74, %cst_37 {dimension_numbers = #tpu.dot_dimension_numbers<[2], [2], [1], [1], [0, 0, 0, 1, 1, 1], [0], [0]>} : vector<2x8x8xf32>, vector<2x8x8xf32>, vector<2x8x8xf32> -> vector<2x8x8xf32>
    "tpu.trace_stop"() : () -> ()
    %cst_38 = arith.constant 0.353553385 : f32
    %78 = vector.broadcast %cst_38 : f32 to vector<2x8x8xf32>
    %79 = arith.mulf %77, %78 : vector<2x8x8xf32>
    %80 = vector.broadcast %63 : vector<2x1x8xf32> to vector<2x8x8xf32>
    %81 = arith.addf %79, %80 : vector<2x8x8xf32>
    %cst_39 = arith.constant dense<0xFF800000> : vector<2x8xf32>
    %82 = vector.multi_reduction <maximumf>, %81, %cst_39 [2] : vector<2x8x8xf32> to vector<2x8xf32>
    %83 = vector.shape_cast %82 : vector<2x8xf32> to vector<2x8x1xf32>
    %84 = vector.broadcast %83 : vector<2x8x1xf32> to vector<2x8x8xf32>
    %85 = arith.subf %81, %84 : vector<2x8x8xf32>
    %86 = math.exp %85 : vector<2x8x8xf32>
    %cst_40 = arith.constant dense<0.000000e+00> : vector<2x8xf32>
    %87 = vector.multi_reduction <add>, %86, %cst_40 [2] : vector<2x8x8xf32> to vector<2x8xf32>
    %88 = vector.shape_cast %87 : vector<2x8xf32> to vector<2x8x1xf32>
    %89 = tpu.reciprocal %88 {approx = true} : vector<2x8x1xf32> -> vector<2x8x1xf32>
    %90 = vector.broadcast %89 : vector<2x8x1xf32> to vector<2x8x8xf32>
    %91 = arith.mulf %86, %90 : vector<2x8x8xf32>
    "tpu.trace_start"() <{level = 10 : i32, message = "bqk,bkd->bqd"}> : () -> ()
    %cst_41 = arith.constant dense<0.000000e+00> : vector<2x8x8xf32>
    %92 = tpu.matmul %91, %76, %cst_41 {dimension_numbers = #tpu.dot_dimension_numbers<[2], [1], [1], [2], [0, 0, 0, 1, 1, 2], [0], [0]>} : vector<2x8x8xf32>, vector<2x8x8xf32>, vector<2x8x8xf32> -> vector<2x8x8xf32>
    "tpu.trace_stop"() : () -> ()
    %93 = vector.shape_cast %92 : vector<2x8x8xf32> to vector<16x8xf32>
    %94 = vector.extract_strided_slice %70 {offsets = [0, 8], sizes = [16, 8], strides = [1, 1]} : vector<16x96xf32> to vector<16x8xf32>
    %95 = vector.shape_cast %94 : vector<16x8xf32> to vector<2x8x8xf32>
    %96 = vector.extract_strided_slice %70 {offsets = [0, 40], sizes = [16, 8], strides = [1, 1]} : vector<16x96xf32> to vector<16x8xf32>
    %97 = vector.shape_cast %96 : vector<16x8xf32> to vector<2x8x8xf32>
    %98 = vector.extract_strided_slice %70 {offsets = [0, 72], sizes = [16, 8], strides = [1, 1]} : vector<16x96xf32> to vector<16x8xf32>
    %99 = vector.shape_cast %98 : vector<16x8xf32> to vector<2x8x8xf32>
    "tpu.trace_start"() <{level = 10 : i32, message = "bqd,bkd->bqk"}> : () -> ()
    %cst_42 = arith.constant dense<0.000000e+00> : vector<2x8x8xf32>
    %100 = tpu.matmul %95, %97, %cst_42 {dimension_numbers = #tpu.dot_dimension_numbers<[2], [2], [1], [1], [0, 0, 0, 1, 1, 1], [0], [0]>} : vector<2x8x8xf32>, vector<2x8x8xf32>, vector<2x8x8xf32> -> vector<2x8x8xf32>
    "tpu.trace_stop"() : () -> ()
    %cst_43 = arith.constant 0.353553385 : f32
    %101 = vector.broadcast %cst_43 : f32 to vector<2x8x8xf32>
    %102 = arith.mulf %100, %101 : vector<2x8x8xf32>
    %103 = vector.broadcast %63 : vector<2x1x8xf32> to vector<2x8x8xf32>
    %104 = arith.addf %102, %103 : vector<2x8x8xf32>
    %cst_44 = arith.constant dense<0xFF800000> : vector<2x8xf32>
    %105 = vector.multi_reduction <maximumf>, %104, %cst_44 [2] : vector<2x8x8xf32> to vector<2x8xf32>
    %106 = vector.shape_cast %105 : vector<2x8xf32> to vector<2x8x1xf32>
    %107 = vector.broadcast %106 : vector<2x8x1xf32> to vector<2x8x8xf32>
    %108 = arith.subf %104, %107 : vector<2x8x8xf32>
    %109 = math.exp %108 : vector<2x8x8xf32>
    %cst_45 = arith.constant dense<0.000000e+00> : vector<2x8xf32>
    %110 = vector.multi_reduction <add>, %109, %cst_45 [2] : vector<2x8x8xf32> to vector<2x8xf32>
    %111 = vector.shape_cast %110 : vector<2x8xf32> to vector<2x8x1xf32>
    %112 = tpu.reciprocal %111 {approx = true} : vector<2x8x1xf32> -> vector<2x8x1xf32>
    %113 = vector.broadcast %112 : vector<2x8x1xf32> to vector<2x8x8xf32>
    %114 = arith.mulf %109, %113 : vector<2x8x8xf32>
    "tpu.trace_start"() <{level = 10 : i32, message = "bqk,bkd->bqd"}> : () -> ()
    %cst_46 = arith.constant dense<0.000000e+00> : vector<2x8x8xf32>
    %115 = tpu.matmul %114, %99, %cst_46 {dimension_numbers = #tpu.dot_dimension_numbers<[2], [1], [1], [2], [0, 0, 0, 1, 1, 2], [0], [0]>} : vector<2x8x8xf32>, vector<2x8x8xf32>, vector<2x8x8xf32> -> vector<2x8x8xf32>
    "tpu.trace_stop"() : () -> ()
    %116 = vector.shape_cast %115 : vector<2x8x8xf32> to vector<16x8xf32>
    %117 = vector.extract_strided_slice %70 {offsets = [0, 16], sizes = [16, 8], strides = [1, 1]} : vector<16x96xf32> to vector<16x8xf32>
    %118 = vector.shape_cast %117 : vector<16x8xf32> to vector<2x8x8xf32>
    %119 = vector.extract_strided_slice %70 {offsets = [0, 48], sizes = [16, 8], strides = [1, 1]} : vector<16x96xf32> to vector<16x8xf32>
    %120 = vector.shape_cast %119 : vector<16x8xf32> to vector<2x8x8xf32>
    %121 = vector.extract_strided_slice %70 {offsets = [0, 80], sizes = [16, 8], strides = [1, 1]} : vector<16x96xf32> to vector<16x8xf32>
    %122 = vector.shape_cast %121 : vector<16x8xf32> to vector<2x8x8xf32>
    "tpu.trace_start"() <{level = 10 : i32, message = "bqd,bkd->bqk"}> : () -> ()
    %cst_47 = arith.constant dense<0.000000e+00> : vector<2x8x8xf32>
    %123 = tpu.matmul %118, %120, %cst_47 {dimension_numbers = #tpu.dot_dimension_numbers<[2], [2], [1], [1], [0, 0, 0, 1, 1, 1], [0], [0]>} : vector<2x8x8xf32>, vector<2x8x8xf32>, vector<2x8x8xf32> -> vector<2x8x8xf32>
    "tpu.trace_stop"() : () -> ()
    %cst_48 = arith.constant 0.353553385 : f32
    %124 = vector.broadcast %cst_48 : f32 to vector<2x8x8xf32>
    %125 = arith.mulf %123, %124 : vector<2x8x8xf32>
    %126 = vector.broadcast %63 : vector<2x1x8xf32> to vector<2x8x8xf32>
    %127 = arith.addf %125, %126 : vector<2x8x8xf32>
    %cst_49 = arith.constant dense<0xFF800000> : vector<2x8xf32>
    %128 = vector.multi_reduction <maximumf>, %127, %cst_49 [2] : vector<2x8x8xf32> to vector<2x8xf32>
    %129 = vector.shape_cast %128 : vector<2x8xf32> to vector<2x8x1xf32>
    %130 = vector.broadcast %129 : vector<2x8x1xf32> to vector<2x8x8xf32>
    %131 = arith.subf %127, %130 : vector<2x8x8xf32>
    %132 = math.exp %131 : vector<2x8x8xf32>
    %cst_50 = arith.constant dense<0.000000e+00> : vector<2x8xf32>
    %133 = vector.multi_reduction <add>, %132, %cst_50 [2] : vector<2x8x8xf32> to vector<2x8xf32>
    %134 = vector.shape_cast %133 : vector<2x8xf32> to vector<2x8x1xf32>
    %135 = tpu.reciprocal %134 {approx = true} : vector<2x8x1xf32> -> vector<2x8x1xf32>
    %136 = vector.broadcast %135 : vector<2x8x1xf32> to vector<2x8x8xf32>
    %137 = arith.mulf %132, %136 : vector<2x8x8xf32>
    "tpu.trace_start"() <{level = 10 : i32, message = "bqk,bkd->bqd"}> : () -> ()
    %cst_51 = arith.constant dense<0.000000e+00> : vector<2x8x8xf32>
    %138 = tpu.matmul %137, %122, %cst_51 {dimension_numbers = #tpu.dot_dimension_numbers<[2], [1], [1], [2], [0, 0, 0, 1, 1, 2], [0], [0]>} : vector<2x8x8xf32>, vector<2x8x8xf32>, vector<2x8x8xf32> -> vector<2x8x8xf32>
    "tpu.trace_stop"() : () -> ()
    %139 = vector.shape_cast %138 : vector<2x8x8xf32> to vector<16x8xf32>
    %140 = vector.extract_strided_slice %70 {offsets = [0, 24], sizes = [16, 8], strides = [1, 1]} : vector<16x96xf32> to vector<16x8xf32>
    %141 = vector.shape_cast %140 : vector<16x8xf32> to vector<2x8x8xf32>
    %142 = vector.extract_strided_slice %70 {offsets = [0, 56], sizes = [16, 8], strides = [1, 1]} : vector<16x96xf32> to vector<16x8xf32>
    %143 = vector.shape_cast %142 : vector<16x8xf32> to vector<2x8x8xf32>
    %144 = vector.extract_strided_slice %70 {offsets = [0, 88], sizes = [16, 8], strides = [1, 1]} : vector<16x96xf32> to vector<16x8xf32>
    %145 = vector.shape_cast %144 : vector<16x8xf32> to vector<2x8x8xf32>
    "tpu.trace_start"() <{level = 10 : i32, message = "bqd,bkd->bqk"}> : () -> ()
    %cst_52 = arith.constant dense<0.000000e+00> : vector<2x8x8xf32>
    %146 = tpu.matmul %141, %143, %cst_52 {dimension_numbers = #tpu.dot_dimension_numbers<[2], [2], [1], [1], [0, 0, 0, 1, 1, 1], [0], [0]>} : vector<2x8x8xf32>, vector<2x8x8xf32>, vector<2x8x8xf32> -> vector<2x8x8xf32>
    "tpu.trace_stop"() : () -> ()
    %cst_53 = arith.constant 0.353553385 : f32
    %147 = vector.broadcast %cst_53 : f32 to vector<2x8x8xf32>
    %148 = arith.mulf %146, %147 : vector<2x8x8xf32>
    %149 = vector.broadcast %63 : vector<2x1x8xf32> to vector<2x8x8xf32>
    %150 = arith.addf %148, %149 : vector<2x8x8xf32>
    %cst_54 = arith.constant dense<0xFF800000> : vector<2x8xf32>
    %151 = vector.multi_reduction <maximumf>, %150, %cst_54 [2] : vector<2x8x8xf32> to vector<2x8xf32>
    %152 = vector.shape_cast %151 : vector<2x8xf32> to vector<2x8x1xf32>
    %153 = vector.broadcast %152 : vector<2x8x1xf32> to vector<2x8x8xf32>
    %154 = arith.subf %150, %153 : vector<2x8x8xf32>
    %155 = math.exp %154 : vector<2x8x8xf32>
    %cst_55 = arith.constant dense<0.000000e+00> : vector<2x8xf32>
    %156 = vector.multi_reduction <add>, %155, %cst_55 [2] : vector<2x8x8xf32> to vector<2x8xf32>
    %157 = vector.shape_cast %156 : vector<2x8xf32> to vector<2x8x1xf32>
    %158 = tpu.reciprocal %157 {approx = true} : vector<2x8x1xf32> -> vector<2x8x1xf32>
    %159 = vector.broadcast %158 : vector<2x8x1xf32> to vector<2x8x8xf32>
    %160 = arith.mulf %155, %159 : vector<2x8x8xf32>
    "tpu.trace_start"() <{level = 10 : i32, message = "bqk,bkd->bqd"}> : () -> ()
    %cst_56 = arith.constant dense<0.000000e+00> : vector<2x8x8xf32>
    %161 = tpu.matmul %160, %145, %cst_56 {dimension_numbers = #tpu.dot_dimension_numbers<[2], [1], [1], [2], [0, 0, 0, 1, 1, 2], [0], [0]>} : vector<2x8x8xf32>, vector<2x8x8xf32>, vector<2x8x8xf32> -> vector<2x8x8xf32>
    "tpu.trace_stop"() : () -> ()
    %162 = vector.shape_cast %161 : vector<2x8x8xf32> to vector<16x8xf32>
    %163 = tpu.concatenate %93, %116, %139, %162 in 1 : vector<16x8xf32>, vector<16x8xf32>, vector<16x8xf32>, vector<16x8xf32> -> vector<16x32xf32>
    %c0_57 = arith.constant 0 : index
    %c0_58 = arith.constant 0 : index
    %c0_59 = arith.constant 0 : index
    %164 = vector.load %arg11[%c0_57, %c0_58, %c0_59] : memref<2x32x32xf32, #tpu.memory_space<vmem>>, vector<1x32x32xf32>
    %165 = vector.shape_cast %164 : vector<1x32x32xf32> to vector<32x32xf32>
    %cst_60 = arith.constant dense<0.000000e+00> : vector<16x32xf32>
    %166 = tpu.matmul %163, %165, %cst_60 {dimension_numbers = #tpu.dot_dimension_numbers<[1], [0], [0], [1], [0, 0, 1, 1], [], []>} : vector<16x32xf32>, vector<32x32xf32>, vector<16x32xf32> -> vector<16x32xf32>
    %c0_61 = arith.constant 0 : index
    %c0_62 = arith.constant 0 : index
    %c0_63 = arith.constant 0 : index
    %167 = vector.load %arg12[%c0_61, %c0_62, %c0_63] : memref<2x1x32xf32, #tpu.memory_space<vmem>>, vector<1x1x32xf32>
    %168 = vector.shape_cast %167 : vector<1x1x32xf32> to vector<1x32xf32>
    %169 = vector.broadcast %168 : vector<1x32xf32> to vector<16x32xf32>
    %170 = arith.addf %166, %169 : vector<16x32xf32>
    %171 = arith.addf %170, %58 : vector<16x32xf32>
    %c0_64 = arith.constant 0 : index
    %c0_65 = arith.constant 0 : index
    %c0_66 = arith.constant 0 : index
    %172 = vector.load %arg13[%c0_64, %c0_65, %c0_66] : memref<2x1x32xf32, #tpu.memory_space<vmem>>, vector<1x1x32xf32>
    %173 = vector.shape_cast %172 : vector<1x1x32xf32> to vector<1x32xf32>
    %c0_67 = arith.constant 0 : index
    %c0_68 = arith.constant 0 : index
    %c0_69 = arith.constant 0 : index
    %174 = vector.load %arg14[%c0_67, %c0_68, %c0_69] : memref<2x1x32xf32, #tpu.memory_space<vmem>>, vector<1x1x32xf32>
    %175 = vector.shape_cast %174 : vector<1x1x32xf32> to vector<1x32xf32>
    %cst_70 = arith.constant dense<0.000000e+00> : vector<16xf32>
    %176 = vector.multi_reduction <add>, %171, %cst_70 [1] : vector<16x32xf32> to vector<16xf32>
    %177 = vector.shape_cast %176 : vector<16xf32> to vector<16x1xf32>
    %cst_71 = arith.constant 3.200000e+01 : f32
    %178 = vector.broadcast %cst_71 : f32 to vector<16x1xf32>
    %179 = arith.divf %177, %178 : vector<16x1xf32>
    %180 = vector.broadcast %179 : vector<16x1xf32> to vector<16x32xf32>
    %181 = arith.subf %171, %180 : vector<16x32xf32>
    %182 = arith.mulf %181, %181 : vector<16x32xf32>
    %cst_72 = arith.constant dense<0.000000e+00> : vector<16xf32>
    %183 = vector.multi_reduction <add>, %182, %cst_72 [1] : vector<16x32xf32> to vector<16xf32>
    %184 = vector.shape_cast %183 : vector<16xf32> to vector<16x1xf32>
    %cst_73 = arith.constant 3.200000e+01 : f32
    %185 = vector.broadcast %cst_73 : f32 to vector<16x1xf32>
    %186 = arith.divf %184, %185 : vector<16x1xf32>
    %187 = vector.broadcast %179 : vector<16x1xf32> to vector<16x32xf32>
    %188 = arith.subf %171, %187 : vector<16x32xf32>
    %cst_74 = arith.constant 9.99999996E-13 : f32
    %189 = vector.broadcast %cst_74 : f32 to vector<16x1xf32>
    %190 = arith.addf %186, %189 : vector<16x1xf32>
    %191 = math.rsqrt %190 : vector<16x1xf32>
    %192 = vector.broadcast %191 : vector<16x1xf32> to vector<16x32xf32>
    %193 = arith.mulf %188, %192 : vector<16x32xf32>
    %194 = vector.broadcast %173 : vector<1x32xf32> to vector<16x32xf32>
    %195 = arith.mulf %193, %194 : vector<16x32xf32>
    %196 = vector.broadcast %175 : vector<1x32xf32> to vector<16x32xf32>
    %197 = arith.addf %195, %196 : vector<16x32xf32>
    %c0_75 = arith.constant 0 : index
    %c0_76 = arith.constant 0 : index
    %c0_77 = arith.constant 0 : index
    %198 = vector.load %arg15[%c0_75, %c0_76, %c0_77] : memref<2x32x64xf32, #tpu.memory_space<vmem>>, vector<1x32x64xf32>
    %199 = vector.shape_cast %198 : vector<1x32x64xf32> to vector<32x64xf32>
    %cst_78 = arith.constant dense<0.000000e+00> : vector<16x64xf32>
    %200 = tpu.matmul %197, %199, %cst_78 {dimension_numbers = #tpu.dot_dimension_numbers<[1], [0], [0], [1], [0, 0, 1, 1], [], []>} : vector<16x32xf32>, vector<32x64xf32>, vector<16x64xf32> -> vector<16x64xf32>
    %c0_79 = arith.constant 0 : index
    %c0_80 = arith.constant 0 : index
    %c0_81 = arith.constant 0 : index
    %201 = vector.load %arg16[%c0_79, %c0_80, %c0_81] : memref<2x1x64xf32, #tpu.memory_space<vmem>>, vector<1x1x64xf32>
    %202 = vector.shape_cast %201 : vector<1x1x64xf32> to vector<1x64xf32>
    %203 = vector.broadcast %202 : vector<1x64xf32> to vector<16x64xf32>
    %204 = arith.addf %200, %203 : vector<16x64xf32>
    %cst_82 = arith.constant 5.000000e-01 : f32
    %205 = vector.broadcast %cst_82 : f32 to vector<16x64xf32>
    %206 = arith.mulf %205, %204 : vector<16x64xf32>
    %cst_83 = arith.constant 0.707106769 : f32
    %207 = vector.broadcast %cst_83 : f32 to vector<16x64xf32>
    %208 = arith.mulf %204, %207 : vector<16x64xf32>
    %cst_84 = arith.constant 0.000000e+00 : f32
    %209 = vector.broadcast %cst_84 : f32 to vector<16x64xf32>
    %210 = arith.cmpf oge, %208, %209 : vector<16x64xf32>
    %cst_85 = arith.constant 1.000000e+00 : f32
    %cst_86 = arith.constant -1.000000e+00 : f32
    %211 = vector.broadcast %cst_85 : f32 to vector<16x64xf32>
    %212 = vector.broadcast %cst_86 : f32 to vector<16x64xf32>
    %213 = arith.select %210, %211, %212 : vector<16x64xi1>, vector<16x64xf32>
    %214 = math.absf %208 : vector<16x64xf32>
    %cst_87 = arith.constant 0.327591091 : f32
    %215 = vector.broadcast %cst_87 : f32 to vector<16x64xf32>
    %216 = arith.mulf %215, %214 : vector<16x64xf32>
    %cst_88 = arith.constant 1.000000e+00 : f32
    %217 = vector.broadcast %cst_88 : f32 to vector<16x64xf32>
    %218 = arith.addf %217, %216 : vector<16x64xf32>
    %cst_89 = arith.constant 1.000000e+00 : f32
    %219 = vector.broadcast %cst_89 : f32 to vector<16x64xf32>
    %220 = arith.divf %219, %218 : vector<16x64xf32>
    %cst_90 = arith.constant 1.06140542 : f32
    %221 = vector.broadcast %cst_90 : f32 to vector<16x64xf32>
    %222 = arith.mulf %221, %220 : vector<16x64xf32>
    %cst_91 = arith.constant -1.45315206 : f32
    %223 = vector.broadcast %cst_91 : f32 to vector<16x64xf32>
    %224 = arith.addf %222, %223 : vector<16x64xf32>
    %225 = arith.mulf %224, %220 : vector<16x64xf32>
    %cst_92 = arith.constant 1.42141378 : f32
    %226 = vector.broadcast %cst_92 : f32 to vector<16x64xf32>
    %227 = arith.addf %225, %226 : vector<16x64xf32>
    %228 = arith.mulf %227, %220 : vector<16x64xf32>
    %cst_93 = arith.constant -0.284496725 : f32
    %229 = vector.broadcast %cst_93 : f32 to vector<16x64xf32>
    %230 = arith.addf %228, %229 : vector<16x64xf32>
    %231 = arith.mulf %230, %220 : vector<16x64xf32>
    %cst_94 = arith.constant 0.254829586 : f32
    %232 = vector.broadcast %cst_94 : f32 to vector<16x64xf32>
    %233 = arith.addf %231, %232 : vector<16x64xf32>
    %234 = arith.mulf %233, %220 : vector<16x64xf32>
    %cst_95 = arith.constant 0.000000e+00 : f32
    %235 = vector.broadcast %cst_95 : f32 to vector<16x64xf32>
    %236 = arith.subf %235, %214 : vector<16x64xf32>
    %237 = arith.mulf %236, %214 : vector<16x64xf32>
    %238 = math.exp %237 : vector<16x64xf32>
    %239 = arith.mulf %234, %238 : vector<16x64xf32>
    %cst_96 = arith.constant 1.000000e+00 : f32
    %240 = vector.broadcast %cst_96 : f32 to vector<16x64xf32>
    %241 = arith.subf %240, %239 : vector<16x64xf32>
    %242 = arith.mulf %213, %241 : vector<16x64xf32>
    %cst_97 = arith.constant 1.000000e+00 : f32
    %243 = vector.broadcast %cst_97 : f32 to vector<16x64xf32>
    %244 = arith.addf %243, %242 : vector<16x64xf32>
    %245 = arith.mulf %206, %244 : vector<16x64xf32>
    %c0_98 = arith.constant 0 : index
    %c0_99 = arith.constant 0 : index
    %c0_100 = arith.constant 0 : index
    %246 = vector.load %arg17[%c0_98, %c0_99, %c0_100] : memref<2x64x32xf32, #tpu.memory_space<vmem>>, vector<1x64x32xf32>
    %247 = vector.shape_cast %246 : vector<1x64x32xf32> to vector<64x32xf32>
    %cst_101 = arith.constant dense<0.000000e+00> : vector<16x32xf32>
    %248 = tpu.matmul %245, %247, %cst_101 {dimension_numbers = #tpu.dot_dimension_numbers<[1], [0], [0], [1], [0, 0, 1, 1], [], []>} : vector<16x64xf32>, vector<64x32xf32>, vector<16x32xf32> -> vector<16x32xf32>
    %c0_102 = arith.constant 0 : index
    %c0_103 = arith.constant 0 : index
    %c0_104 = arith.constant 0 : index
    %249 = vector.load %arg18[%c0_102, %c0_103, %c0_104] : memref<2x1x32xf32, #tpu.memory_space<vmem>>, vector<1x1x32xf32>
    %250 = vector.shape_cast %249 : vector<1x1x32xf32> to vector<1x32xf32>
    %251 = vector.broadcast %250 : vector<1x32xf32> to vector<16x32xf32>
    %252 = arith.addf %248, %251 : vector<16x32xf32>
    %253 = arith.addf %252, %197 : vector<16x32xf32>
    %c0_105 = arith.constant 0 : index
    %c0_106 = arith.constant 0 : index
    %c0_107 = arith.constant 0 : index
    %254 = vector.load %arg19[%c0_105, %c0_106, %c0_107] : memref<2x1x32xf32, #tpu.memory_space<vmem>>, vector<1x1x32xf32>
    %255 = vector.shape_cast %254 : vector<1x1x32xf32> to vector<1x32xf32>
    %c0_108 = arith.constant 0 : index
    %c0_109 = arith.constant 0 : index
    %c0_110 = arith.constant 0 : index
    %256 = vector.load %arg20[%c0_108, %c0_109, %c0_110] : memref<2x1x32xf32, #tpu.memory_space<vmem>>, vector<1x1x32xf32>
    %257 = vector.shape_cast %256 : vector<1x1x32xf32> to vector<1x32xf32>
    %cst_111 = arith.constant dense<0.000000e+00> : vector<16xf32>
    %258 = vector.multi_reduction <add>, %253, %cst_111 [1] : vector<16x32xf32> to vector<16xf32>
    %259 = vector.shape_cast %258 : vector<16xf32> to vector<16x1xf32>
    %cst_112 = arith.constant 3.200000e+01 : f32
    %260 = vector.broadcast %cst_112 : f32 to vector<16x1xf32>
    %261 = arith.divf %259, %260 : vector<16x1xf32>
    %262 = vector.broadcast %261 : vector<16x1xf32> to vector<16x32xf32>
    %263 = arith.subf %253, %262 : vector<16x32xf32>
    %264 = arith.mulf %263, %263 : vector<16x32xf32>
    %cst_113 = arith.constant dense<0.000000e+00> : vector<16xf32>
    %265 = vector.multi_reduction <add>, %264, %cst_113 [1] : vector<16x32xf32> to vector<16xf32>
    %266 = vector.shape_cast %265 : vector<16xf32> to vector<16x1xf32>
    %cst_114 = arith.constant 3.200000e+01 : f32
    %267 = vector.broadcast %cst_114 : f32 to vector<16x1xf32>
    %268 = arith.divf %266, %267 : vector<16x1xf32>
    %269 = vector.broadcast %261 : vector<16x1xf32> to vector<16x32xf32>
    %270 = arith.subf %253, %269 : vector<16x32xf32>
    %cst_115 = arith.constant 9.99999996E-13 : f32
    %271 = vector.broadcast %cst_115 : f32 to vector<16x1xf32>
    %272 = arith.addf %268, %271 : vector<16x1xf32>
    %273 = math.rsqrt %272 : vector<16x1xf32>
    %274 = vector.broadcast %273 : vector<16x1xf32> to vector<16x32xf32>
    %275 = arith.mulf %270, %274 : vector<16x32xf32>
    %276 = vector.broadcast %255 : vector<1x32xf32> to vector<16x32xf32>
    %277 = arith.mulf %275, %276 : vector<16x32xf32>
    %278 = vector.broadcast %257 : vector<1x32xf32> to vector<16x32xf32>
    %279 = arith.addf %277, %278 : vector<16x32xf32>
    %c1 = arith.constant 1 : index
    %c0_116 = arith.constant 0 : index
    %c0_117 = arith.constant 0 : index
    %280 = vector.load %arg9[%c1, %c0_116, %c0_117] : memref<2x32x96xf32, #tpu.memory_space<vmem>>, vector<1x32x96xf32>
    %281 = vector.shape_cast %280 : vector<1x32x96xf32> to vector<32x96xf32>
    %cst_118 = arith.constant dense<0.000000e+00> : vector<16x96xf32>
    %282 = tpu.matmul %279, %281, %cst_118 {dimension_numbers = #tpu.dot_dimension_numbers<[1], [0], [0], [1], [0, 0, 1, 1], [], []>} : vector<16x32xf32>, vector<32x96xf32>, vector<16x96xf32> -> vector<16x96xf32>
    %c1_119 = arith.constant 1 : index
    %c0_120 = arith.constant 0 : index
    %c0_121 = arith.constant 0 : index
    %283 = vector.load %arg10[%c1_119, %c0_120, %c0_121] : memref<2x1x96xf32, #tpu.memory_space<vmem>>, vector<1x1x96xf32>
    %284 = vector.shape_cast %283 : vector<1x1x96xf32> to vector<1x96xf32>
    %285 = vector.broadcast %284 : vector<1x96xf32> to vector<16x96xf32>
    %286 = arith.addf %282, %285 : vector<16x96xf32>
    %287 = vector.extract_strided_slice %286 {offsets = [0, 0], sizes = [16, 8], strides = [1, 1]} : vector<16x96xf32> to vector<16x8xf32>
    %288 = vector.shape_cast %287 : vector<16x8xf32> to vector<2x8x8xf32>
    %289 = vector.extract_strided_slice %286 {offsets = [0, 32], sizes = [16, 8], strides = [1, 1]} : vector<16x96xf32> to vector<16x8xf32>
    %290 = vector.shape_cast %289 : vector<16x8xf32> to vector<2x8x8xf32>
    %291 = vector.extract_strided_slice %286 {offsets = [0, 64], sizes = [16, 8], strides = [1, 1]} : vector<16x96xf32> to vector<16x8xf32>
    %292 = vector.shape_cast %291 : vector<16x8xf32> to vector<2x8x8xf32>
    "tpu.trace_start"() <{level = 10 : i32, message = "bqd,bkd->bqk"}> : () -> ()
    %cst_122 = arith.constant dense<0.000000e+00> : vector<2x8x8xf32>
    %293 = tpu.matmul %288, %290, %cst_122 {dimension_numbers = #tpu.dot_dimension_numbers<[2], [2], [1], [1], [0, 0, 0, 1, 1, 1], [0], [0]>} : vector<2x8x8xf32>, vector<2x8x8xf32>, vector<2x8x8xf32> -> vector<2x8x8xf32>
    "tpu.trace_stop"() : () -> ()
    %cst_123 = arith.constant 0.353553385 : f32
    %294 = vector.broadcast %cst_123 : f32 to vector<2x8x8xf32>
    %295 = arith.mulf %293, %294 : vector<2x8x8xf32>
    %296 = vector.broadcast %63 : vector<2x1x8xf32> to vector<2x8x8xf32>
    %297 = arith.addf %295, %296 : vector<2x8x8xf32>
    %cst_124 = arith.constant dense<0xFF800000> : vector<2x8xf32>
    %298 = vector.multi_reduction <maximumf>, %297, %cst_124 [2] : vector<2x8x8xf32> to vector<2x8xf32>
    %299 = vector.shape_cast %298 : vector<2x8xf32> to vector<2x8x1xf32>
    %300 = vector.broadcast %299 : vector<2x8x1xf32> to vector<2x8x8xf32>
    %301 = arith.subf %297, %300 : vector<2x8x8xf32>
    %302 = math.exp %301 : vector<2x8x8xf32>
    %cst_125 = arith.constant dense<0.000000e+00> : vector<2x8xf32>
    %303 = vector.multi_reduction <add>, %302, %cst_125 [2] : vector<2x8x8xf32> to vector<2x8xf32>
    %304 = vector.shape_cast %303 : vector<2x8xf32> to vector<2x8x1xf32>
    %305 = tpu.reciprocal %304 {approx = true} : vector<2x8x1xf32> -> vector<2x8x1xf32>
    %306 = vector.broadcast %305 : vector<2x8x1xf32> to vector<2x8x8xf32>
    %307 = arith.mulf %302, %306 : vector<2x8x8xf32>
    "tpu.trace_start"() <{level = 10 : i32, message = "bqk,bkd->bqd"}> : () -> ()
    %cst_126 = arith.constant dense<0.000000e+00> : vector<2x8x8xf32>
    %308 = tpu.matmul %307, %292, %cst_126 {dimension_numbers = #tpu.dot_dimension_numbers<[2], [1], [1], [2], [0, 0, 0, 1, 1, 2], [0], [0]>} : vector<2x8x8xf32>, vector<2x8x8xf32>, vector<2x8x8xf32> -> vector<2x8x8xf32>
    "tpu.trace_stop"() : () -> ()
    %309 = vector.shape_cast %308 : vector<2x8x8xf32> to vector<16x8xf32>
    %310 = vector.extract_strided_slice %286 {offsets = [0, 8], sizes = [16, 8], strides = [1, 1]} : vector<16x96xf32> to vector<16x8xf32>
    %311 = vector.shape_cast %310 : vector<16x8xf32> to vector<2x8x8xf32>
    %312 = vector.extract_strided_slice %286 {offsets = [0, 40], sizes = [16, 8], strides = [1, 1]} : vector<16x96xf32> to vector<16x8xf32>
    %313 = vector.shape_cast %312 : vector<16x8xf32> to vector<2x8x8xf32>
    %314 = vector.extract_strided_slice %286 {offsets = [0, 72], sizes = [16, 8], strides = [1, 1]} : vector<16x96xf32> to vector<16x8xf32>
    %315 = vector.shape_cast %314 : vector<16x8xf32> to vector<2x8x8xf32>
    "tpu.trace_start"() <{level = 10 : i32, message = "bqd,bkd->bqk"}> : () -> ()
    %cst_127 = arith.constant dense<0.000000e+00> : vector<2x8x8xf32>
    %316 = tpu.matmul %311, %313, %cst_127 {dimension_numbers = #tpu.dot_dimension_numbers<[2], [2], [1], [1], [0, 0, 0, 1, 1, 1], [0], [0]>} : vector<2x8x8xf32>, vector<2x8x8xf32>, vector<2x8x8xf32> -> vector<2x8x8xf32>
    "tpu.trace_stop"() : () -> ()
    %cst_128 = arith.constant 0.353553385 : f32
    %317 = vector.broadcast %cst_128 : f32 to vector<2x8x8xf32>
    %318 = arith.mulf %316, %317 : vector<2x8x8xf32>
    %319 = vector.broadcast %63 : vector<2x1x8xf32> to vector<2x8x8xf32>
    %320 = arith.addf %318, %319 : vector<2x8x8xf32>
    %cst_129 = arith.constant dense<0xFF800000> : vector<2x8xf32>
    %321 = vector.multi_reduction <maximumf>, %320, %cst_129 [2] : vector<2x8x8xf32> to vector<2x8xf32>
    %322 = vector.shape_cast %321 : vector<2x8xf32> to vector<2x8x1xf32>
    %323 = vector.broadcast %322 : vector<2x8x1xf32> to vector<2x8x8xf32>
    %324 = arith.subf %320, %323 : vector<2x8x8xf32>
    %325 = math.exp %324 : vector<2x8x8xf32>
    %cst_130 = arith.constant dense<0.000000e+00> : vector<2x8xf32>
    %326 = vector.multi_reduction <add>, %325, %cst_130 [2] : vector<2x8x8xf32> to vector<2x8xf32>
    %327 = vector.shape_cast %326 : vector<2x8xf32> to vector<2x8x1xf32>
    %328 = tpu.reciprocal %327 {approx = true} : vector<2x8x1xf32> -> vector<2x8x1xf32>
    %329 = vector.broadcast %328 : vector<2x8x1xf32> to vector<2x8x8xf32>
    %330 = arith.mulf %325, %329 : vector<2x8x8xf32>
    "tpu.trace_start"() <{level = 10 : i32, message = "bqk,bkd->bqd"}> : () -> ()
    %cst_131 = arith.constant dense<0.000000e+00> : vector<2x8x8xf32>
    %331 = tpu.matmul %330, %315, %cst_131 {dimension_numbers = #tpu.dot_dimension_numbers<[2], [1], [1], [2], [0, 0, 0, 1, 1, 2], [0], [0]>} : vector<2x8x8xf32>, vector<2x8x8xf32>, vector<2x8x8xf32> -> vector<2x8x8xf32>
    "tpu.trace_stop"() : () -> ()
    %332 = vector.shape_cast %331 : vector<2x8x8xf32> to vector<16x8xf32>
    %333 = vector.extract_strided_slice %286 {offsets = [0, 16], sizes = [16, 8], strides = [1, 1]} : vector<16x96xf32> to vector<16x8xf32>
    %334 = vector.shape_cast %333 : vector<16x8xf32> to vector<2x8x8xf32>
    %335 = vector.extract_strided_slice %286 {offsets = [0, 48], sizes = [16, 8], strides = [1, 1]} : vector<16x96xf32> to vector<16x8xf32>
    %336 = vector.shape_cast %335 : vector<16x8xf32> to vector<2x8x8xf32>
    %337 = vector.extract_strided_slice %286 {offsets = [0, 80], sizes = [16, 8], strides = [1, 1]} : vector<16x96xf32> to vector<16x8xf32>
    %338 = vector.shape_cast %337 : vector<16x8xf32> to vector<2x8x8xf32>
    "tpu.trace_start"() <{level = 10 : i32, message = "bqd,bkd->bqk"}> : () -> ()
    %cst_132 = arith.constant dense<0.000000e+00> : vector<2x8x8xf32>
    %339 = tpu.matmul %334, %336, %cst_132 {dimension_numbers = #tpu.dot_dimension_numbers<[2], [2], [1], [1], [0, 0, 0, 1, 1, 1], [0], [0]>} : vector<2x8x8xf32>, vector<2x8x8xf32>, vector<2x8x8xf32> -> vector<2x8x8xf32>
    "tpu.trace_stop"() : () -> ()
    %cst_133 = arith.constant 0.353553385 : f32
    %340 = vector.broadcast %cst_133 : f32 to vector<2x8x8xf32>
    %341 = arith.mulf %339, %340 : vector<2x8x8xf32>
    %342 = vector.broadcast %63 : vector<2x1x8xf32> to vector<2x8x8xf32>
    %343 = arith.addf %341, %342 : vector<2x8x8xf32>
    %cst_134 = arith.constant dense<0xFF800000> : vector<2x8xf32>
    %344 = vector.multi_reduction <maximumf>, %343, %cst_134 [2] : vector<2x8x8xf32> to vector<2x8xf32>
    %345 = vector.shape_cast %344 : vector<2x8xf32> to vector<2x8x1xf32>
    %346 = vector.broadcast %345 : vector<2x8x1xf32> to vector<2x8x8xf32>
    %347 = arith.subf %343, %346 : vector<2x8x8xf32>
    %348 = math.exp %347 : vector<2x8x8xf32>
    %cst_135 = arith.constant dense<0.000000e+00> : vector<2x8xf32>
    %349 = vector.multi_reduction <add>, %348, %cst_135 [2] : vector<2x8x8xf32> to vector<2x8xf32>
    %350 = vector.shape_cast %349 : vector<2x8xf32> to vector<2x8x1xf32>
    %351 = tpu.reciprocal %350 {approx = true} : vector<2x8x1xf32> -> vector<2x8x1xf32>
    %352 = vector.broadcast %351 : vector<2x8x1xf32> to vector<2x8x8xf32>
    %353 = arith.mulf %348, %352 : vector<2x8x8xf32>
    "tpu.trace_start"() <{level = 10 : i32, message = "bqk,bkd->bqd"}> : () -> ()
    %cst_136 = arith.constant dense<0.000000e+00> : vector<2x8x8xf32>
    %354 = tpu.matmul %353, %338, %cst_136 {dimension_numbers = #tpu.dot_dimension_numbers<[2], [1], [1], [2], [0, 0, 0, 1, 1, 2], [0], [0]>} : vector<2x8x8xf32>, vector<2x8x8xf32>, vector<2x8x8xf32> -> vector<2x8x8xf32>
    "tpu.trace_stop"() : () -> ()
    %355 = vector.shape_cast %354 : vector<2x8x8xf32> to vector<16x8xf32>
    %356 = vector.extract_strided_slice %286 {offsets = [0, 24], sizes = [16, 8], strides = [1, 1]} : vector<16x96xf32> to vector<16x8xf32>
    %357 = vector.shape_cast %356 : vector<16x8xf32> to vector<2x8x8xf32>
    %358 = vector.extract_strided_slice %286 {offsets = [0, 56], sizes = [16, 8], strides = [1, 1]} : vector<16x96xf32> to vector<16x8xf32>
    %359 = vector.shape_cast %358 : vector<16x8xf32> to vector<2x8x8xf32>
    %360 = vector.extract_strided_slice %286 {offsets = [0, 88], sizes = [16, 8], strides = [1, 1]} : vector<16x96xf32> to vector<16x8xf32>
    %361 = vector.shape_cast %360 : vector<16x8xf32> to vector<2x8x8xf32>
    "tpu.trace_start"() <{level = 10 : i32, message = "bqd,bkd->bqk"}> : () -> ()
    %cst_137 = arith.constant dense<0.000000e+00> : vector<2x8x8xf32>
    %362 = tpu.matmul %357, %359, %cst_137 {dimension_numbers = #tpu.dot_dimension_numbers<[2], [2], [1], [1], [0, 0, 0, 1, 1, 1], [0], [0]>} : vector<2x8x8xf32>, vector<2x8x8xf32>, vector<2x8x8xf32> -> vector<2x8x8xf32>
    "tpu.trace_stop"() : () -> ()
    %cst_138 = arith.constant 0.353553385 : f32
    %363 = vector.broadcast %cst_138 : f32 to vector<2x8x8xf32>
    %364 = arith.mulf %362, %363 : vector<2x8x8xf32>
    %365 = vector.broadcast %63 : vector<2x1x8xf32> to vector<2x8x8xf32>
    %366 = arith.addf %364, %365 : vector<2x8x8xf32>
    %cst_139 = arith.constant dense<0xFF800000> : vector<2x8xf32>
    %367 = vector.multi_reduction <maximumf>, %366, %cst_139 [2] : vector<2x8x8xf32> to vector<2x8xf32>
    %368 = vector.shape_cast %367 : vector<2x8xf32> to vector<2x8x1xf32>
    %369 = vector.broadcast %368 : vector<2x8x1xf32> to vector<2x8x8xf32>
    %370 = arith.subf %366, %369 : vector<2x8x8xf32>
    %371 = math.exp %370 : vector<2x8x8xf32>
    %cst_140 = arith.constant dense<0.000000e+00> : vector<2x8xf32>
    %372 = vector.multi_reduction <add>, %371, %cst_140 [2] : vector<2x8x8xf32> to vector<2x8xf32>
    %373 = vector.shape_cast %372 : vector<2x8xf32> to vector<2x8x1xf32>
    %374 = tpu.reciprocal %373 {approx = true} : vector<2x8x1xf32> -> vector<2x8x1xf32>
    %375 = vector.broadcast %374 : vector<2x8x1xf32> to vector<2x8x8xf32>
    %376 = arith.mulf %371, %375 : vector<2x8x8xf32>
    "tpu.trace_start"() <{level = 10 : i32, message = "bqk,bkd->bqd"}> : () -> ()
    %cst_141 = arith.constant dense<0.000000e+00> : vector<2x8x8xf32>
    %377 = tpu.matmul %376, %361, %cst_141 {dimension_numbers = #tpu.dot_dimension_numbers<[2], [1], [1], [2], [0, 0, 0, 1, 1, 2], [0], [0]>} : vector<2x8x8xf32>, vector<2x8x8xf32>, vector<2x8x8xf32> -> vector<2x8x8xf32>
    "tpu.trace_stop"() : () -> ()
    %378 = vector.shape_cast %377 : vector<2x8x8xf32> to vector<16x8xf32>
    %379 = tpu.concatenate %309, %332, %355, %378 in 1 : vector<16x8xf32>, vector<16x8xf32>, vector<16x8xf32>, vector<16x8xf32> -> vector<16x32xf32>
    %c1_142 = arith.constant 1 : index
    %c0_143 = arith.constant 0 : index
    %c0_144 = arith.constant 0 : index
    %380 = vector.load %arg11[%c1_142, %c0_143, %c0_144] : memref<2x32x32xf32, #tpu.memory_space<vmem>>, vector<1x32x32xf32>
    %381 = vector.shape_cast %380 : vector<1x32x32xf32> to vector<32x32xf32>
    %cst_145 = arith.constant dense<0.000000e+00> : vector<16x32xf32>
    %382 = tpu.matmul %379, %381, %cst_145 {dimension_numbers = #tpu.dot_dimension_numbers<[1], [0], [0], [1], [0, 0, 1, 1], [], []>} : vector<16x32xf32>, vector<32x32xf32>, vector<16x32xf32> -> vector<16x32xf32>
    %c1_146 = arith.constant 1 : index
    %c0_147 = arith.constant 0 : index
    %c0_148 = arith.constant 0 : index
    %383 = vector.load %arg12[%c1_146, %c0_147, %c0_148] : memref<2x1x32xf32, #tpu.memory_space<vmem>>, vector<1x1x32xf32>
    %384 = vector.shape_cast %383 : vector<1x1x32xf32> to vector<1x32xf32>
    %385 = vector.broadcast %384 : vector<1x32xf32> to vector<16x32xf32>
    %386 = arith.addf %382, %385 : vector<16x32xf32>
    %387 = arith.addf %386, %279 : vector<16x32xf32>
    %c1_149 = arith.constant 1 : index
    %c0_150 = arith.constant 0 : index
    %c0_151 = arith.constant 0 : index
    %388 = vector.load %arg13[%c1_149, %c0_150, %c0_151] : memref<2x1x32xf32, #tpu.memory_space<vmem>>, vector<1x1x32xf32>
    %389 = vector.shape_cast %388 : vector<1x1x32xf32> to vector<1x32xf32>
    %c1_152 = arith.constant 1 : index
    %c0_153 = arith.constant 0 : index
    %c0_154 = arith.constant 0 : index
    %390 = vector.load %arg14[%c1_152, %c0_153, %c0_154] : memref<2x1x32xf32, #tpu.memory_space<vmem>>, vector<1x1x32xf32>
    %391 = vector.shape_cast %390 : vector<1x1x32xf32> to vector<1x32xf32>
    %cst_155 = arith.constant dense<0.000000e+00> : vector<16xf32>
    %392 = vector.multi_reduction <add>, %387, %cst_155 [1] : vector<16x32xf32> to vector<16xf32>
    %393 = vector.shape_cast %392 : vector<16xf32> to vector<16x1xf32>
    %cst_156 = arith.constant 3.200000e+01 : f32
    %394 = vector.broadcast %cst_156 : f32 to vector<16x1xf32>
    %395 = arith.divf %393, %394 : vector<16x1xf32>
    %396 = vector.broadcast %395 : vector<16x1xf32> to vector<16x32xf32>
    %397 = arith.subf %387, %396 : vector<16x32xf32>
    %398 = arith.mulf %397, %397 : vector<16x32xf32>
    %cst_157 = arith.constant dense<0.000000e+00> : vector<16xf32>
    %399 = vector.multi_reduction <add>, %398, %cst_157 [1] : vector<16x32xf32> to vector<16xf32>
    %400 = vector.shape_cast %399 : vector<16xf32> to vector<16x1xf32>
    %cst_158 = arith.constant 3.200000e+01 : f32
    %401 = vector.broadcast %cst_158 : f32 to vector<16x1xf32>
    %402 = arith.divf %400, %401 : vector<16x1xf32>
    %403 = vector.broadcast %395 : vector<16x1xf32> to vector<16x32xf32>
    %404 = arith.subf %387, %403 : vector<16x32xf32>
    %cst_159 = arith.constant 9.99999996E-13 : f32
    %405 = vector.broadcast %cst_159 : f32 to vector<16x1xf32>
    %406 = arith.addf %402, %405 : vector<16x1xf32>
    %407 = math.rsqrt %406 : vector<16x1xf32>
    %408 = vector.broadcast %407 : vector<16x1xf32> to vector<16x32xf32>
    %409 = arith.mulf %404, %408 : vector<16x32xf32>
    %410 = vector.broadcast %389 : vector<1x32xf32> to vector<16x32xf32>
    %411 = arith.mulf %409, %410 : vector<16x32xf32>
    %412 = vector.broadcast %391 : vector<1x32xf32> to vector<16x32xf32>
    %413 = arith.addf %411, %412 : vector<16x32xf32>
    %c1_160 = arith.constant 1 : index
    %c0_161 = arith.constant 0 : index
    %c0_162 = arith.constant 0 : index
    %414 = vector.load %arg15[%c1_160, %c0_161, %c0_162] : memref<2x32x64xf32, #tpu.memory_space<vmem>>, vector<1x32x64xf32>
    %415 = vector.shape_cast %414 : vector<1x32x64xf32> to vector<32x64xf32>
    %cst_163 = arith.constant dense<0.000000e+00> : vector<16x64xf32>
    %416 = tpu.matmul %413, %415, %cst_163 {dimension_numbers = #tpu.dot_dimension_numbers<[1], [0], [0], [1], [0, 0, 1, 1], [], []>} : vector<16x32xf32>, vector<32x64xf32>, vector<16x64xf32> -> vector<16x64xf32>
    %c1_164 = arith.constant 1 : index
    %c0_165 = arith.constant 0 : index
    %c0_166 = arith.constant 0 : index
    %417 = vector.load %arg16[%c1_164, %c0_165, %c0_166] : memref<2x1x64xf32, #tpu.memory_space<vmem>>, vector<1x1x64xf32>
    %418 = vector.shape_cast %417 : vector<1x1x64xf32> to vector<1x64xf32>
    %419 = vector.broadcast %418 : vector<1x64xf32> to vector<16x64xf32>
    %420 = arith.addf %416, %419 : vector<16x64xf32>
    %cst_167 = arith.constant 5.000000e-01 : f32
    %421 = vector.broadcast %cst_167 : f32 to vector<16x64xf32>
    %422 = arith.mulf %421, %420 : vector<16x64xf32>
    %cst_168 = arith.constant 0.707106769 : f32
    %423 = vector.broadcast %cst_168 : f32 to vector<16x64xf32>
    %424 = arith.mulf %420, %423 : vector<16x64xf32>
    %cst_169 = arith.constant 0.000000e+00 : f32
    %425 = vector.broadcast %cst_169 : f32 to vector<16x64xf32>
    %426 = arith.cmpf oge, %424, %425 : vector<16x64xf32>
    %cst_170 = arith.constant 1.000000e+00 : f32
    %cst_171 = arith.constant -1.000000e+00 : f32
    %427 = vector.broadcast %cst_170 : f32 to vector<16x64xf32>
    %428 = vector.broadcast %cst_171 : f32 to vector<16x64xf32>
    %429 = arith.select %426, %427, %428 : vector<16x64xi1>, vector<16x64xf32>
    %430 = math.absf %424 : vector<16x64xf32>
    %cst_172 = arith.constant 0.327591091 : f32
    %431 = vector.broadcast %cst_172 : f32 to vector<16x64xf32>
    %432 = arith.mulf %431, %430 : vector<16x64xf32>
    %cst_173 = arith.constant 1.000000e+00 : f32
    %433 = vector.broadcast %cst_173 : f32 to vector<16x64xf32>
    %434 = arith.addf %433, %432 : vector<16x64xf32>
    %cst_174 = arith.constant 1.000000e+00 : f32
    %435 = vector.broadcast %cst_174 : f32 to vector<16x64xf32>
    %436 = arith.divf %435, %434 : vector<16x64xf32>
    %cst_175 = arith.constant 1.06140542 : f32
    %437 = vector.broadcast %cst_175 : f32 to vector<16x64xf32>
    %438 = arith.mulf %437, %436 : vector<16x64xf32>
    %cst_176 = arith.constant -1.45315206 : f32
    %439 = vector.broadcast %cst_176 : f32 to vector<16x64xf32>
    %440 = arith.addf %438, %439 : vector<16x64xf32>
    %441 = arith.mulf %440, %436 : vector<16x64xf32>
    %cst_177 = arith.constant 1.42141378 : f32
    %442 = vector.broadcast %cst_177 : f32 to vector<16x64xf32>
    %443 = arith.addf %441, %442 : vector<16x64xf32>
    %444 = arith.mulf %443, %436 : vector<16x64xf32>
    %cst_178 = arith.constant -0.284496725 : f32
    %445 = vector.broadcast %cst_178 : f32 to vector<16x64xf32>
    %446 = arith.addf %444, %445 : vector<16x64xf32>
    %447 = arith.mulf %446, %436 : vector<16x64xf32>
    %cst_179 = arith.constant 0.254829586 : f32
    %448 = vector.broadcast %cst_179 : f32 to vector<16x64xf32>
    %449 = arith.addf %447, %448 : vector<16x64xf32>
    %450 = arith.mulf %449, %436 : vector<16x64xf32>
    %cst_180 = arith.constant 0.000000e+00 : f32
    %451 = vector.broadcast %cst_180 : f32 to vector<16x64xf32>
    %452 = arith.subf %451, %430 : vector<16x64xf32>
    %453 = arith.mulf %452, %430 : vector<16x64xf32>
    %454 = math.exp %453 : vector<16x64xf32>
    %455 = arith.mulf %450, %454 : vector<16x64xf32>
    %cst_181 = arith.constant 1.000000e+00 : f32
    %456 = vector.broadcast %cst_181 : f32 to vector<16x64xf32>
    %457 = arith.subf %456, %455 : vector<16x64xf32>
    %458 = arith.mulf %429, %457 : vector<16x64xf32>
    %cst_182 = arith.constant 1.000000e+00 : f32
    %459 = vector.broadcast %cst_182 : f32 to vector<16x64xf32>
    %460 = arith.addf %459, %458 : vector<16x64xf32>
    %461 = arith.mulf %422, %460 : vector<16x64xf32>
    %c1_183 = arith.constant 1 : index
    %c0_184 = arith.constant 0 : index
    %c0_185 = arith.constant 0 : index
    %462 = vector.load %arg17[%c1_183, %c0_184, %c0_185] : memref<2x64x32xf32, #tpu.memory_space<vmem>>, vector<1x64x32xf32>
    %463 = vector.shape_cast %462 : vector<1x64x32xf32> to vector<64x32xf32>
    %cst_186 = arith.constant dense<0.000000e+00> : vector<16x32xf32>
    %464 = tpu.matmul %461, %463, %cst_186 {dimension_numbers = #tpu.dot_dimension_numbers<[1], [0], [0], [1], [0, 0, 1, 1], [], []>} : vector<16x64xf32>, vector<64x32xf32>, vector<16x32xf32> -> vector<16x32xf32>
    %c1_187 = arith.constant 1 : index
    %c0_188 = arith.constant 0 : index
    %c0_189 = arith.constant 0 : index
    %465 = vector.load %arg18[%c1_187, %c0_188, %c0_189] : memref<2x1x32xf32, #tpu.memory_space<vmem>>, vector<1x1x32xf32>
    %466 = vector.shape_cast %465 : vector<1x1x32xf32> to vector<1x32xf32>
    %467 = vector.broadcast %466 : vector<1x32xf32> to vector<16x32xf32>
    %468 = arith.addf %464, %467 : vector<16x32xf32>
    %469 = arith.addf %468, %413 : vector<16x32xf32>
    %c1_190 = arith.constant 1 : index
    %c0_191 = arith.constant 0 : index
    %c0_192 = arith.constant 0 : index
    %470 = vector.load %arg19[%c1_190, %c0_191, %c0_192] : memref<2x1x32xf32, #tpu.memory_space<vmem>>, vector<1x1x32xf32>
    %471 = vector.shape_cast %470 : vector<1x1x32xf32> to vector<1x32xf32>
    %c1_193 = arith.constant 1 : index
    %c0_194 = arith.constant 0 : index
    %c0_195 = arith.constant 0 : index
    %472 = vector.load %arg20[%c1_193, %c0_194, %c0_195] : memref<2x1x32xf32, #tpu.memory_space<vmem>>, vector<1x1x32xf32>
    %473 = vector.shape_cast %472 : vector<1x1x32xf32> to vector<1x32xf32>
    %cst_196 = arith.constant dense<0.000000e+00> : vector<16xf32>
    %474 = vector.multi_reduction <add>, %469, %cst_196 [1] : vector<16x32xf32> to vector<16xf32>
    %475 = vector.shape_cast %474 : vector<16xf32> to vector<16x1xf32>
    %cst_197 = arith.constant 3.200000e+01 : f32
    %476 = vector.broadcast %cst_197 : f32 to vector<16x1xf32>
    %477 = arith.divf %475, %476 : vector<16x1xf32>
    %478 = vector.broadcast %477 : vector<16x1xf32> to vector<16x32xf32>
    %479 = arith.subf %469, %478 : vector<16x32xf32>
    %480 = arith.mulf %479, %479 : vector<16x32xf32>
    %cst_198 = arith.constant dense<0.000000e+00> : vector<16xf32>
    %481 = vector.multi_reduction <add>, %480, %cst_198 [1] : vector<16x32xf32> to vector<16xf32>
    %482 = vector.shape_cast %481 : vector<16xf32> to vector<16x1xf32>
    %cst_199 = arith.constant 3.200000e+01 : f32
    %483 = vector.broadcast %cst_199 : f32 to vector<16x1xf32>
    %484 = arith.divf %482, %483 : vector<16x1xf32>
    %485 = vector.broadcast %477 : vector<16x1xf32> to vector<16x32xf32>
    %486 = arith.subf %469, %485 : vector<16x32xf32>
    %cst_200 = arith.constant 9.99999996E-13 : f32
    %487 = vector.broadcast %cst_200 : f32 to vector<16x1xf32>
    %488 = arith.addf %484, %487 : vector<16x1xf32>
    %489 = math.rsqrt %488 : vector<16x1xf32>
    %490 = vector.broadcast %489 : vector<16x1xf32> to vector<16x32xf32>
    %491 = arith.mulf %486, %490 : vector<16x32xf32>
    %492 = vector.broadcast %471 : vector<1x32xf32> to vector<16x32xf32>
    %493 = arith.mulf %491, %492 : vector<16x32xf32>
    %494 = vector.broadcast %473 : vector<1x32xf32> to vector<16x32xf32>
    %495 = arith.addf %493, %494 : vector<16x32xf32>
    %c0_201 = arith.constant 0 : index
    %c0_202 = arith.constant 0 : index
    %496 = vector.load %arg21[%c0_201, %c0_202] : memref<16x32xf32, #tpu.memory_space<vmem>>, vector<16x32xf32>
    tpu.vector_store %arg21[%c0_201, %c0_202], %495 {strides = array<i32>} : memref<16x32xf32, #tpu.memory_space<vmem>>, vector<16x32xf32>,
    return
  }
}

</mosaic_0001>

<bundles_post_ra>
// kernel: tile.0
= control target key start
LH: loop header
LB: loop body
LE: loop exit
PB: predicated region body
PF: predicated region fallthrough
CT: control target
= control target key end

     0   :  { %s66_s8 = smov 125   ;;  %s67_s9 = smov 123   ;;  %vm7_vm0 = vcmask 7168   ;;  %s117_s0 = inlined_call_operand.vmem [shape: s32[2,8], index: 0, kind: input, shape index: {}]   ;;  %s118_s1 = inlined_call_operand.vmem [shape: s32[16,1], index: 1, kind: output, shape index: {}]  }
   0x1   :  { %v4_v0 = vld [vmem:[%s117_s0] sm:$0x3]  ;;  %s65_s0 = smov 127   ;;  %s68_s10 = smov 126  }
   0x2   :  { %5 = vst [vmem:[#allocation0] sm:$0x3] %v4_v0  ;;  %s69_s11 = smov 124   ;;  %s70_s12 = smov 122  }
   0x3   :  { %s71_s13 = smov 121  }
   0x9   :  { %v9_v1 = vld [vmem:[#allocation0] sm:$0x3]  }
   0xa   :  { %v21_v2 = vld [vmem:[#allocation0] sm:$0x3]   ;;  %10 = vrot.lane.b32.xlu0 %v9_v1, %s65_s0 }
   0xb   :  { %22 = vrot.lane.b32.xlu1 %v21_v2, %s66_s8  ;;  %v33_v3 = vld [vmem:[#allocation0] sm:$0x3]  }
   0xc   :  { %34 = vrot.lane.b32.xlu2 %v33_v3, %s67_s9  ;;  %v15_v4 = vld [vmem:[#allocation0] sm:$0x3]  }
   0xd   :  { %v27_v5 = vld [vmem:[#allocation0] sm:$0x3]  }
   0xe   :  { %v39_v6 = vld [vmem:[#allocation0] sm:$0x3]  }
   0xf   :  { %v45_v7 = vld [vmem:[#allocation0] sm:$0x3]  }
  0x10   :  { %v6_v8 = vld [vmem:[#allocation0] sm:$0x3]  }
  0x11   :  { %8 = vst.msk [vmem:[%s118_s1] ss:$8 sm:$0x3] %vm7_vm0, %v6_v8  }
  0x12   :  { %16 = vrot.lane.b32.xlu0 %v15_v4, %s68_s10 }
  0x13   :  { %28 = vrot.lane.b32.xlu1 %v27_v5, %s69_s11 }
  0x14   :  { %40 = vrot.lane.b32.xlu2 %v39_v6, %s70_s12 }
  0x1a   :  { %46 = vrot.lane.b32.xlu0 %v45_v7, %s71_s13 }
  0x66   :  { %v35_v9 = vpop.permute.xlu2 %34  }
  0x67   :  { %55 = vst.msk [vmem:[%s118_s1 + $0x5] ss:$8 sm:$0x3] %vm7_vm0, %v35_v9  }
  0x6e   :  { %v41_v10 = vpop.permute.xlu2 %40  }
  0x6f   :  { %56 = vst.msk [vmem:[%s118_s1 + $0x6] ss:$8 sm:$0x3] %vm7_vm0, %v41_v10  }
  0x7c   :  { %v11_v11 = vpop.permute.xlu0 %10  }
  0x7d   :  { %v23_v12 = vpop.permute.xlu1 %22   ;;  %51 = vst.msk [vmem:[%s118_s1 + $0x1] ss:$8 sm:$0x3] %vm7_vm0, %v11_v11  }
  0x7e   :  { %53 = vst.msk [vmem:[%s118_s1 + $0x3] ss:$8 sm:$0x3] %vm7_vm0, %v23_v12  }
  0x84   :  { %v17_v13 = vpop.permute.xlu0 %16  }
  0x85   :  { %v29_v14 = vpop.permute.xlu1 %28   ;;  %52 = vst.msk [vmem:[%s118_s1 + $0x2] ss:$8 sm:$0x3] %vm7_vm0, %v17_v13  }
  0x86   :  { %54 = vst.msk [vmem:[%s118_s1 + $0x4] ss:$8 sm:$0x3] %vm7_vm0, %v29_v14  }
  0x8c   :  { %v47_v15 = vpop.permute.xlu0 %46  }
  0x8d   :  { %57 = vst.msk [vmem:[%s118_s1 + $0x7] ss:$8 sm:$0x3] %vm7_vm0, %v47_v15  }

// kernel: bert_forward.1
= control target key start
LH: loop header
LB: loop body
LE: loop exit
PB: predicated region body
PF: predicated region fallthrough
CT: control target
= control target key end

     0   :  { %s3167_s0 = inlined_call_operand.vmem [shape: s32[16,1], index: 0, kind: input, shape index: {}]   ;;  %s3168_s1 = inlined_call_operand.vmem [shape: s32[16,1], index: 1, kind: input, shape index: {}]   ;;  %s3169_s2 = inlined_call_operand.vmem [shape: s32[16,1], index: 2, kind: input, shape index: {}]   ;;  %s3170_s3 = inlined_call_operand.vmem [shape: f32[2,1,8], index: 3, kind: input, shape index: {}]   ;;  %s3171_s4 = inlined_call_operand.vmem [shape: f32[100,32], index: 4, kind: input, shape index: {}]   ;;  %s3172_s5 = inlined_call_operand.vmem [shape: f32[2,32], index: 5, kind: input, shape index: {}]   ;;  %s3173_s6 = inlined_call_operand.vmem [shape: f32[32,32], index: 6, kind: input, shape index: {}]   ;;  %s3174_s7 = inlined_call_operand.vmem [shape: f32[1,32], index: 7, kind: input, shape index: {}]   ;;  %s3175_s8 = inlined_call_operand.vmem [shape: f32[1,32], index: 8, kind: input, shape index: {}]   ;;  %s3176_s9 = inlined_call_operand.vmem [shape: f32[2,32,96], index: 9, kind: input, shape index: {}]   ;;  %s3177_s10 = inlined_call_operand.vmem [shape: f32[2,1,96], index: 10, kind: input, shape index: {}]   ;;  %s3178_s11 = inlined_call_operand.vmem [shape: f32[2,32,32], index: 11, kind: input, shape index: {}]   ;;  %s3179_s12 = inlined_call_operand.vmem [shape: f32[2,1,32], index: 12, kind: input, shape index: {}]   ;;  %s3180_s13 = inlined_call_operand.vmem [shape: f32[2,1,32], index: 13, kind: input, shape index: {}]   ;;  %s3181_s14 = inlined_call_operand.vmem [shape: f32[2,1,32], index: 14, kind: input, shape index: {}]   ;;  %s3182_s15 = inlined_call_operand.vmem [shape: f32[2,32,64], index: 15, kind: input, shape index: {}]   ;;  %s3183_s16 = inlined_call_operand.vmem [shape: f32[2,1,64], index: 16, kind: input, shape index: {}]   ;;  %s3184_s17 = inlined_call_operand.vmem [shape: f32[2,64,32], index: 17, kind: input, shape index: {}]   ;;  %s3185_s18 = inlined_call_operand.vmem [shape: f32[2,1,32], index: 18, kind: input, shape index: {}]   ;;  %s3186_s19 = inlined_call_operand.vmem [shape: f32[2,1,32], index: 19, kind: input, shape index: {}]   ;;  %s3187_s20 = inlined_call_operand.vmem [shape: f32[2,1,32], index: 20, kind: input, shape index: {}]   ;;  %s3188_s21 = inlined_call_operand.hbm [shape: f32[16,32], index: 21, kind: output, shape index: {}]  }
   0x1   :  { %3200 = sst [smem:[#allocation5_spill]] %s3167_s0 }
   0x2   :  { %3201 = sst [smem:[#allocation6_spill]] %s3168_s1 }
   0x3   :  { %3202 = sst [smem:[#allocation7_spill]] %s3169_s2 }
   0x4   :  { %3203 = sst [smem:[#allocation8_spill]] %s3170_s3 }
   0x5   :  { %3204 = sst [smem:[#allocation9_spill]] %s3171_s4 }
   0x6   :  { %3205 = sst [smem:[#allocation10_spill]] %s3172_s5 }
   0x7   :  { %s3206_s26 = sld [smem:[#allocation5_spill]]  ;;  %vm171_vm0 = vcmask 1043456   ;;  %v2421_v2 = vmov 0  }
   0x8   :  { %2253 = vset.pattern.permute.xlu1 %v2421_v2  ;;  %2252 = vset.pattern.permute.xlu0 %v2421_v2  ;;  %s3207_s0 = sld [smem:[#allocation9_spill]] }
   0x9   :  { %2254 = vset.pattern.permute.xlu2 %v2421_v2  ;;  %s3208_s24 = sld [smem:[#allocation7_spill]] }
   0xd   :  { %v70_v0 = vld [vmem:[%s3206_s26 + $0x8] sm:$0xff]  ;;  %v69_v1 = vld [vmem:[%s3206_s26] sm:$0xff] }
   0xe   :  { %v95_v3 = vld [vmem:[%s3207_s0 + $0x60] sm:$0xf]  ;;  %75 = vperm.xlu1 %2253, %v70_v0   ;;  %72 = vperm.xlu0 %2252, %v69_v1   ;;  %v94_v4 = vld [vmem:[%s3207_s0 + $0x58] sm:$0xff]  ;;  %v93_v5 = vld [vmem:[%s3207_s0 + $0x50] sm:$0xff] }
   0xf   :  { %2137 = vmatpush.msk.msra.mxu1 %vm171_vm0, %v95_v3  ;;  %v97_v6 = vld [vmem:[%s3208_s24 + $0x8] sm:$0xff]  ;;  %v96_v7 = vld [vmem:[%s3208_s24] sm:$0xff]  ;;  %v90_v10 = vld [vmem:[%s3207_s0 + $0x38] sm:$0xff] }
  0x10   :  { %v92_v8 = vld [vmem:[%s3207_s0 + $0x48] sm:$0xff]  ;;  %v91_v9 = vld [vmem:[%s3207_s0 + $0x40] sm:$0xff] }
  0x11   :  { %179 = vmatpush.msra.mxu1 %v94_v4 }
  0x13   :  { %180 = vmatpush.msra.mxu1 %v93_v5 }
  0x15   :  { %181 = vmatpush.msra.mxu1 %v92_v8 }
  0x16   :  { %102 = vperm.xlu1 %2253, %v97_v6   ;;  %99 = vperm.xlu0 %2252, %v96_v7  }
  0x17   :  { %182 = vmatpush.msra.mxu1 %v91_v9 }
  0x18   :  { %26 = vsyncpa [#allocation3], 0  ;;  %v89_v11 = vld [vmem:[%s3207_s0 + $0x30] sm:$0xff]  ;;  %v88_v12 = vld [vmem:[%s3207_s0 + $0x28] sm:$0xff]  ;;  %s3209_s27 = sld [smem:[#allocation6_spill]]  ;;  %v77_v25 = vlaneseq  ;;  %vm164_vm1 = vcmask 818176  }
  0x19   :  { %183 = vmatpush.msra.mxu1 %v90_v10  ;;  %v87_v13 = vld [vmem:[%s3207_s0 + $0x20] sm:$0xff]  ;;  %v86_v14 = vld [vmem:[%s3207_s0 + $0x18] sm:$0xff]  ;;  %v85_v15 = vld [vmem:[%s3207_s0 + $0x10] sm:$0xff]  ;;  %v2422_v30 = vmov 0.0   ;;  %vm112_vm4 = vcmask 261120   ;;  %s3210_s4 = sld [smem:[#allocation10_spill]] }
  0x1a   :  { %v84_v16 = vld [vmem:[%s3207_s0 + $0x8] sm:$0xff]  ;;  %v83_v17 = vld [vmem:[%s3207_s0] sm:$0xff]  ;;  %v111_v18 = vld [vmem:[%s3173_s6 + $0x18] sm:$0xff]  ;;  %v78_v27 = vand.u32 127, %v77_v25  ;;  %v2423_v57 = vmov 32.0   ;;  %s2424_s28 = smov 96  }
  0x1b   :  { %184 = vmatpush.msra.mxu1 %v89_v11  ;;  %v110_v19 = vld [vmem:[%s3173_s6 + $0x10] sm:$0xff]  ;;  %131 = vmatpush.msra.mxu0 %v111_v18  ;;  %v109_v20 = vld [vmem:[%s3173_s6 + $0x8] sm:$0xff]  ;;  %v108_v21 = vld [vmem:[%s3173_s6] sm:$0xff]  ;;  %2293 = vrcp.f32 %v2423_v57  ;;  %s2425_s6 = smov 88   ;;  %s2426_s29 = smov 120   ;;  %vm309_vm14 = vcmask 64512  }
  0x1c   :  { %v272_v10 = vld [vmem:[%s3176_s9 + $0x18] sm:$0xff]  ;;  %v271_v11 = vld [vmem:[%s3176_s9 + $0x10] sm:$0xff]  ;;  %s3211_s5 = sld [smem:[#allocation8_spill]]  ;;  %s2427_s1 = smov 64   ;;  %vm873_vm15 = vcmask 130048   ;;  %vm876_vm0 = vcmask 195584  }
  0x1d   :  { %185 = vmatpush.msra.mxu1 %v88_v12  ;;  %132 = vmatpush.msra.mxu0 %v110_v19  ;;  %v270_v12 = vld [vmem:[%s3176_s9 + $0x8] sm:$0xff]  ;;  %s2428_s24 = smov 112   ;;  %s2429_s2 = smov 80  }
  0x1e   :  { %v143_v22 = vld [vmem:[%s3209_s27] sm:$0xff]  ;;  %v144_v24 = vld [vmem:[%s3209_s27 + $0x8] sm:$0xff]  ;;  %295 = vmatpush.msra.mxu2 %v272_v10  ;;  %s3194_s25 = smov 56   ;;  %s2431_s0 = smov 72  }
  0x1f   :  { %186 = vmatpush.msra.mxu1 %v87_v13  ;;  %133 = vmatpush.msra.mxu0 %v109_v20  ;;  %v145_v23 = vcvt.s32.f32 %v143_v22  ;;  %v146_v26 = vcvt.s32.f32 %v144_v24  ;;  %v142_v37 = vld [vmem:[%s3210_s4] sm:$0x3]  ;;  %s2432_s26 = smov 48   ;;  %s2433_s27 = smov 104  }
  0x20   :  { %v147_v38 = vperm.slane %v142_v37, 0  ;;  %v148_v39 = vperm.slane %v142_v37, 1  ;;  %296 = vmatpush.msra.mxu2 %v271_v11  ;;  %v269_v13 = vld [vmem:[%s3176_s9] sm:$0xff]  ;;  %s3195_s3 = smov 40   ;;  %s3198_s4 = smov 24  }
  0x21   :  { %187 = vmatpush.msra.mxu1 %v86_v14  ;;  %134 = vmatpush.msra.mxu0 %v108_v21  ;;  %v2294_v58 = vpop.eup %2293 }
  0x22   :  { %152 = vperm.xlu2 %2254, %v145_v23   ;;  %v149_v40 = vsub.f32 %v148_v39, %v147_v38  ;;  %v209_v59 = vmul.f32 32.0, %v2294_v58  ;;  %vm213_vm7 = vweird.f32 %v2294_v58  ;;  %297 = vmatpush.msra.mxu2 %v270_v12 }
  0x23   :  { %188 = vmatpush.msra.mxu1 %v85_v15 }
  0x24   :  { %v210_v60 = vsub.f32 1.0, %v209_v59  ;;  %298 = vmatpush.msra.mxu2 %v269_v13 }
  0x25   :  { %189 = vmatpush.msra.mxu1 %v84_v16 }
  0x26   :  { %v211_v61 = vmul.f32 %v2294_v58, %v210_v60 }
  0x27   :  { %190 = vmatpush.msra.mxu1 %v83_v17 }
  0x28   :  { %v212_v62 = vadd.f32 %v2294_v58, %v211_v61 }
  0x2a   :  { %157 = vperm.xlu2 %2254, %v146_v26   ;;  %v2627_v63 = vsel %vm213_vm7, %v2294_v58, %v212_v62 }
  0x7c   :  { %v153_v41 = vpop.permute.xlu2 %152 }
  0x7d   :  { %v160_v42 = vmul.f32 %v153_v41, %v149_v40 }
  0x7f   :  { %v162_v44 = vadd.f32 %v160_v42, %v147_v38  ;;  %v2277_v42 = vld [vmem:[%s3177_s10] ss:$0 sm:$0xff] }
  0x80   :  { %v73_v28 = vpop.permute.xlu0 %72  ;;  %v76_v29 = vpop.permute.xlu1 %75 }
  0x81   :  { %vm79_vm2 = vcmp.eq.s32.totalorder %v73_v28, %v78_v27  ;;  %vm80_vm3 = vcmp.eq.s32.totalorder %v76_v29, %v78_v27  ;;  %v2275_v28 = vld [vmem:[%s3174_s7] ss:$0 sm:$0xff]  ;;  %s3196_s7 = smov 8  }
  0x82   :  { %v81_v31 = vsel %vm79_vm2, 1.0, %v2422_v30  ;;  %v82_v32 = vsel %vm80_vm3, 1.0, %v2422_v30 }
  0x83   :  { %2138 = vmatmul.msk.f32.vlgmr.msra.gmra.mxu1 %vm164_vm1, %v81_v31 }
  0x84   :  { %v158_v47 = vpop.permute.xlu2 %157 }
  0x85   :  { %v161_v49 = vmul.f32 %v158_v47, %v149_v40 }
  0x87   :  { %v163_v53 = vadd.f32 %v161_v49, %v147_v38 }
  0x88   :  { %v100_v33 = vpop.permute.xlu0 %99  ;;  %v103_v35 = vpop.permute.xlu1 %102 }
  0x89   :  { %vm104_vm5 = vcmp.eq.s32.totalorder %v100_v33, %v78_v27  ;;  %vm105_vm6 = vcmp.eq.s32.totalorder %v103_v35, %v78_v27 }
  0x8a   :  { %v106_v34 = vsel %vm104_vm5, 1.0, %v2422_v30  ;;  %v107_v36 = vsel %vm105_vm6, 1.0, %v2422_v30 }
  0x8b   :  { %2135 = vmatmul.msk.f32.vlgmr.msra.gmra.mxu0 %vm112_vm4, %v106_v34  ;;  %2139 = vmatmul.msk.f32.gmra.mxu1 %vm164_vm1, %v82_v32  ;;  %v2276_v32 = vld [vmem:[%s3175_s8] ss:$0 sm:$0xff]  ;;  %s2436_s8 = smov 16  }
  0x93   :  { %2136 = vmatmul.msk.f32.gmra.mxu0 %vm112_vm4, %v107_v36 }
 0x100   :  { %v192_v43 = vpop.f32.mrf.mxu1 }
 0x108   :  { %v136_v45 = vpop.f32.mrf.mxu0  ;;  %v195_v51 = vpop.f32.mrf.mxu1 }
 0x109   :  { %v193_v46 = vadd.f32 %v192_v43, %v136_v45 }
 0x10b   :  { %v198_v48 = vadd.f32 %v193_v46, %v162_v44 }
 0x10d   :  { %v202_v50 = vsel %vm112_vm4, %v198_v48, 0.0 }
 0x10e   :  { %203 = vadd.xlane.f32.xlu0 %v202_v50 }
 0x110   :  { %v139_v52 = vpop.f32.mrf.mxu0 }
 0x111   :  { %v196_v54 = vadd.f32 %v195_v51, %v139_v52  ;;  %v263_v51 = vld [vmem:[%s3211_s5] sm:$0x1]  ;;  %v264_v52 = vld [vmem:[%s3211_s5 + $0x1] sm:$0x1] }
 0x113   :  { %v199_v55 = vadd.f32 %v196_v54, %v163_v53  ;;  %v265_v53 = vsub.f32 1.0, %v263_v51  ;;  %v266_v54 = vsub.f32 1.0, %v264_v52 }
 0x115   :  { %v205_v56 = vsel %vm112_vm4, %v199_v55, 0.0  ;;  %v268_v57 = vmul.f32 -10000.0, %v266_v54 }
 0x116   :  { %206 = vadd.xlane.f32.xlu1 %v205_v56  ;;  %v267_v56 = vmul.f32 -10000.0, %v265_v53 }
 0x117   :  { %v2692_v61 = vperm.slane %v268_v57, 0 }
 0x118   :  { %v2690_v60 = vperm.slane %v267_v56, 0 }
 0x181   :  { %v204_v0 = vpop.xlane.xlu0 %203 }
 0x182   :  { %v215_v1 = vmul.f32 %v2627_v63, %v204_v0 }
 0x184   :  { %v217_v2 = vsub.f32 %v198_v48, %v215_v1 }
 0x186   :  { %v219_v3 = vmul.f32 %v217_v2, %v217_v2 }
 0x188   :  { %v221_v4 = vsel %vm112_vm4, %v219_v3, 0.0 }
 0x189   :  { %222 = vadd.xlane.f32.xlu2 %v221_v4  ;;  %v207_v5 = vpop.xlane.xlu1 %206 }
 0x18a   :  { %v216_v6 = vmul.f32 %v2627_v63, %v207_v5 }
 0x18c   :  { %v218_v7 = vsub.f32 %v199_v55, %v216_v6 }
 0x18e   :  { %v220_v8 = vmul.f32 %v218_v7, %v218_v7 }
 0x190   :  { %v224_v9 = vsel %vm112_vm4, %v220_v8, 0.0 }
 0x191   :  { %225 = vadd.xlane.f32.xlu2 %v224_v9 }
 0x1fc   :  { %v223_v14 = vpop.xlane.xlu2 %222 }
 0x1fd   :  { %v227_v15 = vmul.f32 %v223_v14, %v2627_v63 }
 0x1ff   :  { %v229_v16 = vadd.f32 1e-12, %v227_v15 }
 0x201   :  { %2295 = vrsqrt.f32 %v229_v16  ;;  %vm237_vm9 = vweird.f32 %v229_v16 }
 0x204   :  { %v226_v17 = vpop.xlane.xlu2 %225 }
 0x205   :  { %v228_v18 = vmul.f32 %v226_v17, %v2627_v63 }
 0x207   :  { %v2296_v19 = vpop.eup %2295  ;;  %v230_v20 = vadd.f32 1e-12, %v228_v18 }
 0x208   :  { %v232_v21 = vmul.f32 %v2296_v19, %v229_v16  ;;  %vm238_vm8 = vweird.f32 %v2296_v19 }
 0x209   :  { %2297 = vrsqrt.f32 %v230_v20  ;;  %vm239_vm10 = vmor %vm237_vm9, %vm238_vm8  ;;  %vm247_vm12 = vweird.f32 %v230_v20 }
 0x20a   :  { %v233_v22 = vmul.f32 %v2296_v19, %v232_v21 }
 0x20c   :  { %v234_v23 = vmul.f32 0.5, %v233_v22 }
 0x20e   :  { %v235_v24 = vsub.f32 1.5, %v234_v23 }
 0x20f   :  { %v2298_v25 = vpop.eup %2297 }
 0x210   :  { %v236_v26 = vmul.f32 %v2296_v19, %v235_v24  ;;  %v242_v27 = vmul.f32 %v2298_v25, %v230_v20  ;;  %vm248_vm11 = vweird.f32 %v2298_v25 }
 0x211   :  { %vm249_vm13 = vmor %vm247_vm12, %vm248_vm11 }
 0x212   :  { %v240_v29 = vsel %vm239_vm10, %v2296_v19, %v236_v26  ;;  %v243_v30 = vmul.f32 %v2298_v25, %v242_v27 }
 0x213   :  { %v251_v31 = vmul.f32 %v240_v29, %v217_v2 }
 0x214   :  { %v244_v33 = vmul.f32 0.5, %v243_v30 }
 0x215   :  { %v256_v34 = vmul.f32 %v2275_v28, %v251_v31 }
 0x216   :  { %v245_v35 = vsub.f32 1.5, %v244_v33 }
 0x217   :  { %v2653_v36 = vadd.f32 %v2276_v32, %v256_v34 }
 0x218   :  { %v246_v37 = vmul.f32 %v2298_v25, %v245_v35 }
 0x219   :  { %2140 = vmatmul.msk.f32.vlgmr.msra.gmra.mxu2 %vm112_vm4, %v2653_v36 }
 0x21a   :  { %v250_v38 = vsel %vm249_vm13, %v2298_v25, %v246_v37 }
 0x21b   :  { %v252_v39 = vmul.f32 %v250_v38, %v218_v7 }
 0x21d   :  { %v257_v40 = vmul.f32 %v2275_v28, %v252_v39 }
 0x21f   :  { %v2657_v41 = vadd.f32 %v2276_v32, %v257_v40 }
 0x221   :  { %2141 = vmatmul.msk.f32.gmra.mxu2 %vm112_vm4, %v2657_v41 }
 0x29c   :  { %v300_v43 = vpop.f32.mrf.mxu2 }
 0x29d   :  { %v2664_v44 = vadd.f32 %v2277_v42, %v300_v43 }
 0x29f   :  { %307 = vrot.lane.b32.xlu0 %v2664_v44, %s2424_s28  ;;  %447 = vrot.lane.b32.xlu2 %v2664_v44, %s2425_s6 }
 0x2a4   :  { %v303_v45 = vpop.f32.mrf.mxu2 }
 0x2a5   :  { %v2670_v46 = vadd.f32 %v2277_v42, %v303_v45 }
 0x2a7   :  { %445 = vrot.lane.b32.xlu0 %v2664_v44, %s2426_s29  ;;  %335 = vrot.lane.b32.xlu1 %v2670_v46, %s2424_s28 }
 0x2f9   :  { %v448_v47 = vpop.permute.xlu2 %447 }
 0x2fa   :  { %2148 = vmatpush.xpose.msk.msrb.mxu2 %vm309_vm14, %v448_v47 }
 0x311   :  { %v308_v48 = vpop.permute.xlu0 %307 }
 0x312   :  { %2142 = vmatpush.xpose.msk.msra.mxu3 %vm309_vm14, %v308_v48 }
 0x315   :  { %2143 = vmatmul.msk.f32.vlgmr.msra.gmra.mxu3 %vm309_vm14, %v2664_v44 }
 0x319   :  { %v446_v49 = vpop.permute.xlu0 %445  ;;  %v336_v50 = vpop.permute.xlu1 %335 }
 0x31a   :  { %2144 = vmatpush.xpose.msk.msrb.mxu3 %vm309_vm14, %v336_v50  ;;  %2149 = vmatmul.msk.f32.vlgmr.msrb.gmra.mxu2 %vm309_vm14, %v446_v49 }
 0x31d   :  { %2145 = vmatmul.msk.f32.vlgmr.msrb.gmra.mxu3 %vm309_vm14, %v2670_v46 }
 0x398   :  { %v331_v55 = vpop.f32.mrf.mxu3 }
 0x399   :  { %v361_v16 = vmul.f32 0.35355338, %v331_v55 }
 0x39b   :  { %v369_v17 = vadd.f32 %v2690_v60, %v361_v16 }
 0x39d   :  { %v470_v58 = vpop.f32.mrf.mxu2  ;;  %v371_v18 = vsel %vm309_vm14, %v369_v17, -inf }
 0x39e   :  { %v501_v59 = vmul.f32 0.35355338, %v470_v58 }
 0x3a0   :  { %v358_v62 = vpop.f32.mrf.mxu3  ;;  %v503_v0 = vadd.f32 %v501_v59, %v2690_v60 }
 0x3a1   :  { %v362_v1 = vmul.f32 0.35355338, %v358_v62 }
 0x3a2   :  { %v505_v2 = vsel %vm309_vm14, %v503_v0, -inf }
 0x3a3   :  { %506 = vmax.xlane.f32.xlu0 %v505_v2  ;;  %v370_v3 = vadd.f32 %v2692_v61, %v362_v1 }
 0x3a5   :  { %v374_v4 = vsel %vm309_vm14, %v370_v3, -inf }
 0x3a6   :  { %375 = vmax.xlane.f32.xlu1 %v374_v4 }
 0x3b7   :  { %419 = vrot.lane.b32.xlu0 %v2670_v46, %s2427_s1 }
 0x3bf   :  { %607 = vrot.lane.b32.xlu0 %v2670_v46, %s2428_s24 }
 0x416   :  { %v507_v5 = vpop.xlane.xlu0 %506 }
 0x417   :  { %v511_v6 = vsub.f32 %v503_v0, %v507_v5 }
 0x419   :  { %v513_v7 = vmul.f32 1.442695, %v511_v6  ;;  %v376_v8 = vpop.xlane.xlu1 %375 }
 0x41a   :  { %v378_v9 = vsub.f32 %v370_v3, %v376_v8 }
 0x41b   :  { %2299 = vpow2.f32 %v513_v7 }
 0x41c   :  { %v381_v10 = vmul.f32 1.442695, %v378_v9 }
 0x41e   :  { %2301 = vpow2.f32 %v381_v10 }
 0x421   :  { %v2300_v11 = vpop.eup %2299 }
 0x422   :  { %v517_v12 = vsel %vm309_vm14, %v2300_v11, 0.0 }
 0x423   :  { %518 = vadd.xlane.f32.xlu1 %v517_v12 }
 0x424   :  { %v2302_v13 = vpop.eup %2301 }
 0x425   :  { %v386_v14 = vsel %vm309_vm14, %v2302_v13, 0.0 }
 0x426   :  { %387 = vadd.xlane.f32.xlu2 %v386_v14 }
 0x429   :  { %v420_v15 = vpop.permute.xlu0 %419 }
 0x42a   :  { %440 = vmatpush.msrb.mxu0 %v420_v15 }
 0x431   :  { %v608_v27 = vpop.permute.xlu0 %607 }
 0x43c   :  { %609 = vrot.lane.b32.xlu1 %v2670_v46, %s2429_s2 }
 0x43e   :  { %527 = vrot.lane.b32.xlu2 %v2664_v44, %s3194_s25 }
 0x467   :  { %372 = vmax.xlane.f32.xlu2 %v371_v18 }
 0x47f   :  { %393 = vrot.lane.b32.xlu2 %v2664_v44, %s2427_s1 }
 0x496   :  { %v519_v20 = vpop.xlane.xlu1 %518 }
 0x499   :  { %v388_v19 = vpop.xlane.xlu2 %387 }
 0x49a   :  { %2303 = vrcp.f32 %v388_v19 }
 0x49b   :  { %2305 = vrcp.f32 %v519_v20 }
 0x4a0   :  { %v2304_v21 = vpop.eup %2303 }
 0x4a1   :  { %v528_v22 = vpop.permute.xlu2 %527  ;;  %v392_v23 = vmul.f32 %v2304_v21, %v2302_v13  ;;  %v2306_v24 = vpop.eup %2305 }
 0x4a2   :  { %548 = vmatpush.msra.mxu0 %v528_v22  ;;  %v525_v25 = vmul.f32 %v2306_v24, %v2300_v11 }
 0x4a3   :  { %2147 = vmatmul.msk.f32.vlgmr.msrb.gmra.mxu0 %vm309_vm14, %v392_v23 }
 0x4ab   :  { %2152 = vmatmul.msk.f32.vlgmr.msra.gmra.mxu0 %vm309_vm14, %v525_v25 }
 0x4ae   :  { %v610_v26 = vpop.permute.xlu1 %609 }
 0x4af   :  { %2156 = vmatpush.xpose.msk.msrb.mxu0 %vm309_vm14, %v610_v26 }
 0x4b3   :  { %2157 = vmatmul.msk.f32.vlgmr.msrb.gmra.mxu0 %vm309_vm14, %v608_v27 }
 0x4da   :  { %v373_v28 = vpop.xlane.xlu2 %372 }
 0x4db   :  { %v377_v29 = vsub.f32 %v369_v17, %v373_v28 }
 0x4dd   :  { %v379_v30 = vmul.f32 1.442695, %v377_v29 }
 0x4df   :  { %2307 = vpow2.f32 %v379_v30 }
 0x4e2   :  { %v394_v31 = vpop.permute.xlu2 %393 }
 0x4e3   :  { %414 = vmatpush.msra.mxu3 %v394_v31 }
 0x4e5   :  { %v2308_v32 = vpop.eup %2307 }
 0x4e6   :  { %v383_v33 = vsel %vm309_vm14, %v2308_v32, 0.0 }
 0x4e7   :  { %384 = vadd.xlane.f32.xlu1 %v383_v33 }
 0x500   :  { %473 = vrot.lane.b32.xlu1 %v2670_v46, %s2426_s29 }
 0x508   :  { %579 = vrot.lane.b32.xlu1 %v2664_v44, %s2428_s24 }
 0x510   :  { %715 = vrot.lane.b32.xlu1 %v2664_v44, %s2431_s0 }
 0x518   :  { %743 = vrot.lane.b32.xlu1 %v2670_v46, %s2431_s0 }
 0x520   :  { %v2725_v34 = vpop.f32.mrf.mxu0 }
 0x528   :  { %v2727_v35 = vpop.f32.mrf.mxu0 }
 0x530   :  { %v632_v37 = vpop.f32.mrf.mxu0 }
 0x531   :  { %v636_v38 = vmul.f32 0.35355338, %v632_v37 }
 0x533   :  { %v638_v39 = vadd.f32 %v636_v38, %v2692_v61 }
 0x535   :  { %v642_v40 = vsel %vm309_vm14, %v638_v39, -inf }
 0x536   :  { %643 = vmax.xlane.f32.xlu0 %v642_v40 }
 0x54a   :  { %475 = vrot.lane.b32.xlu0 %v2670_v46, %s2425_s6 }
 0x552   :  { %581 = vrot.lane.b32.xlu0 %v2664_v44, %s2429_s2 }
 0x55a   :  { %687 = vrot.lane.b32.xlu0 %v2670_v46, %s2432_s26  ;;  %v385_v42 = vpop.xlane.xlu1 %384 }
 0x55b   :  { %2309 = vrcp.f32 %v385_v42 }
 0x561   :  { %v2310_v43 = vpop.eup %2309 }
 0x562   :  { %v391_v45 = vmul.f32 %v2310_v43, %v2308_v32  ;;  %713 = vrot.lane.b32.xlu0 %v2664_v44, %s2433_s27 }
 0x564   :  { %2146 = vmatmul.msk.f32.vlgmr.msra.gmra.mxu3 %vm309_vm14, %v391_v45 }
 0x56a   :  { %741 = vrot.lane.b32.xlu0 %v2670_v46, %s2433_s27 }
 0x572   :  { %v474_v47 = vpop.permute.xlu1 %473 }
 0x57a   :  { %v580_v48 = vpop.permute.xlu1 %579 }
 0x582   :  { %v716_v49 = vpop.permute.xlu1 %715 }
 0x58a   :  { %v744_v50 = vpop.permute.xlu1 %743 }
 0x58b   :  { %2162 = vmatpush.xpose.msk.msra.mxu0 %vm309_vm14, %v744_v50 }
 0x5a9   :  { %v644_v51 = vpop.xlane.xlu0 %643 }
 0x5aa   :  { %v646_v52 = vsub.f32 %v638_v39, %v644_v51 }
 0x5ac   :  { %v649_v53 = vmul.f32 1.442695, %v646_v52 }
 0x5ae   :  { %2311 = vpow2.f32 %v649_v53 }
 0x5b4   :  { %v2312_v54 = vpop.eup %2311 }
 0x5b5   :  { %v654_v55 = vsel %vm309_vm14, %v2312_v54, 0.0 }
 0x5b6   :  { %655 = vadd.xlane.f32.xlu2 %v654_v55 }
 0x5bc   :  { %v476_v56 = vpop.permute.xlu0 %475 }
 0x5bd   :  { %2150 = vmatpush.xpose.msk.msrb.mxu3 %vm309_vm14, %v476_v56 }
 0x5c0   :  { %2151 = vmatmul.msk.f32.vlgmr.msrb.gmra.mxu3 %vm309_vm14, %v474_v47 }
 0x5c4   :  { %v582_v57 = vpop.permute.xlu0 %581 }
 0x5c5   :  { %2154 = vmatpush.xpose.msk.msra.mxu3 %vm309_vm14, %v582_v57 }
 0x5c8   :  { %2155 = vmatmul.msk.f32.vlgmr.msra.gmra.mxu3 %vm309_vm14, %v580_v48 }
 0x5cc   :  { %v688_v58 = vpop.permute.xlu0 %687 }
 0x5cd   :  { %708 = vmatpush.msrb.mxu3 %v688_v58 }
 0x5cf   :  { %2160 = vmatpush.xpose.msk.msra.mxu3 %vm309_vm14, %v716_v49 }
 0x5d4   :  { %v714_v59 = vpop.permute.xlu0 %713 }
 0x5dc   :  { %v742_v62 = vpop.permute.xlu0 %741 }
 0x5dd   :  { %2163 = vmatmul.msk.f32.vlgmr.msra.gmra.mxu0 %vm309_vm14, %v742_v62 }
 0x5e7   :  { %v2751_v3 = vpop.f32.mrf.mxu3 }
 0x629   :  { %v656_v0 = vpop.xlane.xlu2 %655 }
 0x62a   :  { %2313 = vrcp.f32 %v656_v0 }
 0x630   :  { %v2314_v1 = vpop.eup %2313 }
 0x631   :  { %v660_v2 = vmul.f32 %v2314_v1, %v2312_v54 }
 0x633   :  { %2159 = vmatmul.msk.f32.vlgmr.msrb.gmra.mxu3 %vm309_vm14, %v660_v2 }
 0x63b   :  { %2161 = vmatmul.msk.f32.vlgmr.msra.gmra.mxu3 %vm309_vm14, %v714_v59 }
 0x643   :  { %v498_v4 = vpop.f32.mrf.mxu3 }
 0x644   :  { %v502_v5 = vmul.f32 0.35355338, %v498_v4  ;;  %v881_v4 = vld [vmem:[%s3178_s11 + $0x10] sm:$0xff] }
 0x646   :  { %v504_v6 = vadd.f32 %v502_v5, %v2692_v61  ;;  %v880_v5 = vld [vmem:[%s3178_s11 + $0x8] sm:$0xff] }
 0x648   :  { %v508_v7 = vsel %vm309_vm14, %v504_v6, -inf }
 0x649   :  { %509 = vmax.xlane.f32.xlu1 %v508_v7  ;;  %v879_v7 = vld [vmem:[%s3178_s11] sm:$0xff] }
 0x64b   :  { %v604_v8 = vpop.f32.mrf.mxu3 }
 0x64c   :  { %v635_v9 = vmul.f32 0.35355338, %v604_v8 }
 0x64e   :  { %v637_v10 = vadd.f32 %v635_v9, %v2690_v60 }
 0x650   :  { %v639_v11 = vsel %vm309_vm14, %v637_v10, -inf }
 0x651   :  { %640 = vmax.xlane.f32.xlu0 %v639_v11 }
 0x65a   :  { %v766_v12 = vpop.f32.mrf.mxu0 }
 0x65b   :  { %v770_v13 = vmul.f32 0.35355338, %v766_v12 }
 0x65d   :  { %v772_v14 = vadd.f32 %v770_v13, %v2692_v61 }
 0x65f   :  { %v776_v15 = vsel %vm309_vm14, %v772_v14, -inf }
 0x660   :  { %777 = vmax.xlane.f32.xlu2 %v776_v15 }
 0x662   :  { %553 = vrot.lane.b32.xlu1 %v2670_v46, %s3194_s25 }
 0x6b6   :  { %v2762_v16 = vpop.f32.mrf.mxu3 }
 0x6bc   :  { %v510_v17 = vpop.xlane.xlu1 %509 }
 0x6bd   :  { %v512_v18 = vsub.f32 %v504_v6, %v510_v17 }
 0x6be   :  { %v738_v19 = vpop.f32.mrf.mxu3 }
 0x6bf   :  { %v515_v20 = vmul.f32 1.442695, %v512_v18  ;;  %v769_v21 = vmul.f32 0.35355338, %v738_v19 }
 0x6c1   :  { %v771_v22 = vadd.f32 %v769_v21, %v2690_v60  ;;  %2315 = vpow2.f32 %v515_v20 }
 0x6c3   :  { %v773_v23 = vsel %vm309_vm14, %v771_v22, -inf }
 0x6c4   :  { %v641_v24 = vpop.xlane.xlu0 %640  ;;  %774 = vmax.xlane.f32.xlu2 %v773_v23 }
 0x6c5   :  { %v645_v25 = vsub.f32 %v637_v10, %v641_v24 }
 0x6c7   :  { %v647_v26 = vmul.f32 1.442695, %v645_v25  ;;  %v2316_v27 = vpop.eup %2315 }
 0x6c8   :  { %v520_v28 = vsel %vm309_vm14, %v2316_v27, 0.0 }
 0x6c9   :  { %2317 = vpow2.f32 %v647_v26 }
 0x6cc   :  { %521 = vadd.xlane.f32.xlu2 %v520_v28 }
 0x6cf   :  { %v2318_v29 = vpop.eup %2317 }
 0x6d0   :  { %v651_v31 = vsel %vm309_vm14, %v2318_v29, 0.0 }
 0x6d3   :  { %v778_v30 = vpop.xlane.xlu2 %777 }
 0x6d4   :  { %v780_v32 = vsub.f32 %v772_v14, %v778_v30  ;;  %v554_v33 = vpop.permute.xlu1 %553  ;;  %652 = vadd.xlane.f32.xlu2 %v651_v31 }
 0x6d5   :  { %574 = vmatpush.msra.mxu2 %v554_v33 }
 0x6d6   :  { %v783_v37 = vmul.f32 1.442695, %v780_v32 }
 0x6d8   :  { %2319 = vpow2.f32 %v783_v37 }
 0x6de   :  { %v2320_v38 = vpop.eup %2319 }
 0x6df   :  { %v788_v39 = vsel %vm309_vm14, %v2320_v38, 0.0 }
 0x6e0   :  { %789 = vadd.xlane.f32.xlu1 %v788_v39  ;;  %v976_v39 = vld [vmem:[%s3182_s15 + $0x10] sm:$0xff] }
 0x6ec   :  { %661 = vrot.lane.b32.xlu2 %v2664_v44, %s2432_s26 }
 0x6f4   :  { %821 = vrot.lane.b32.xlu2 %v2670_v46, %s3195_s3 }
 0x737   :  { %v775_v40 = vpop.xlane.xlu2 %774 }
 0x738   :  { %v779_v42 = vsub.f32 %v771_v22, %v775_v40  ;;  %v975_v40 = vld [vmem:[%s3182_s15 + $0x8] sm:$0xff] }
 0x73a   :  { %v781_v43 = vmul.f32 1.442695, %v779_v42  ;;  %v974_v42 = vld [vmem:[%s3182_s15] sm:$0xff] }
 0x73c   :  { %2321 = vpow2.f32 %v781_v43 }
 0x73f   :  { %v522_v45 = vpop.xlane.xlu2 %521 }
 0x740   :  { %2323 = vrcp.f32 %v522_v45 }
 0x742   :  { %v2322_v47 = vpop.eup %2321 }
 0x743   :  { %v785_v48 = vsel %vm309_vm14, %v2322_v47, 0.0 }
 0x744   :  { %786 = vadd.xlane.f32.xlu0 %v785_v48 }
 0x746   :  { %v2324_v49 = vpop.eup %2323 }
 0x747   :  { %v526_v50 = vmul.f32 %v2324_v49, %v2316_v27  ;;  %v653_v51 = vpop.xlane.xlu2 %652 }
 0x748   :  { %2325 = vrcp.f32 %v653_v51 }
 0x749   :  { %2153 = vmatmul.msk.f32.vlgmr.msra.gmra.mxu2 %vm309_vm14, %v526_v50 }
 0x74e   :  { %v2326_v52 = vpop.eup %2325 }
 0x74f   :  { %v659_v53 = vmul.f32 %v2326_v52, %v2318_v29  ;;  %v662_v54 = vpop.permute.xlu2 %661 }
 0x750   :  { %682 = vmatpush.msrb.mxu2 %v662_v54 }
 0x751   :  { %2158 = vmatmul.msk.f32.vlgmr.msrb.gmra.mxu2 %vm309_vm14, %v659_v53 }
 0x753   :  { %v790_v46 = vpop.xlane.xlu1 %789 }
 0x754   :  { %2327 = vrcp.f32 %v790_v46 }
 0x757   :  { %v822_v55 = vpop.permute.xlu2 %821 }
 0x758   :  { %795 = vrot.lane.b32.xlu0 %v2664_v44, %s3195_s3  ;;  %842 = vmatpush.msrb.mxu1 %v822_v55 }
 0x75a   :  { %v2328_v56 = vpop.eup %2327 }
 0x75b   :  { %v794_v57 = vmul.f32 %v2328_v56, %v2320_v38 }
 0x75d   :  { %2165 = vmatmul.msk.f32.vlgmr.msrb.gmra.mxu1 %vm309_vm14, %v794_v57  ;;  %v2279_v57 = vld [vmem:[%s3180_s13] ss:$0 sm:$0xff] }
 0x760   :  { %849 = vrot.lane.b32.xlu0 %v2727_v35, %s3196_s7  ;;  %v882_v35 = vld [vmem:[%s3178_s11 + $0x18] sm:$0xff] }
 0x761   :  { %905 = vmatpush.msrb.mxu3 %v882_v35 }
 0x763   :  { %906 = vmatpush.msrb.mxu3 %v881_v4 }
 0x765   :  { %907 = vmatpush.msrb.mxu3 %v880_v5 }
 0x767   :  { %908 = vmatpush.msrb.mxu3 %v879_v7 }
 0x7b7   :  { %v787_v58 = vpop.xlane.xlu0 %786 }
 0x7b8   :  { %2329 = vrcp.f32 %v787_v58 }
 0x7be   :  { %v2330_v59 = vpop.eup %2329 }
 0x7bf   :  { %v793_v62 = vmul.f32 %v2330_v59, %v2322_v47 }
 0x7ca   :  { %v796_v0 = vpop.permute.xlu0 %795 }
 0x7cb   :  { %816 = vmatpush.msra.mxu2 %v796_v0 }
 0x7cc   :  { %v576_v1 = vpop.f32.mrf.mxu2  ;;  %2164 = vmatmul.msk.f32.vlgmr.msra.gmra.mxu2 %vm309_vm14, %v793_v62 }
 0x7d2   :  { %v850_v9 = vpop.permute.xlu0 %849 }
 0x7d3   :  { %v871_v10 = vsel %vm309_vm14, %v2751_v3, %v850_v9  ;;  %v2278_v3 = vld [vmem:[%s3179_s12] ss:$0 sm:$0xff] }
 0x7d4   :  { %v684_v2 = vpop.f32.mrf.mxu2 }
 0x7d5   :  { %857 = vrot.lane.b32.xlu2 %v684_v2, %s2436_s8 }
 0x7da   :  { %v844_v44 = vpop.f32.mrf.mxu1 }
 0x7dd   :  { %851 = vrot.lane.b32.xlu2 %v576_v1, %s3196_s7  ;;  %v2280_v1 = vld [vmem:[%s3181_s14] ss:$0 sm:$0xff] }
 0x7e5   :  { %867 = vrot.lane.b32.xlu2 %v844_v44, %s3198_s4 }
 0x82f   :  { %v858_v8 = vpop.permute.xlu2 %857 }
 0x830   :  { %v874_v12 = vsel %vm873_vm15, %v871_v10, %v858_v8  ;;  %v2281_v10 = vld [vmem:[%s3183_s16] ss:$0 sm:$0xff] }
 0x837   :  { %v852_v11 = vpop.permute.xlu2 %851 }
 0x838   :  { %v872_v15 = vsel %vm309_vm14, %v2725_v34, %v852_v11 }
 0x83f   :  { %v868_v17 = vpop.permute.xlu2 %867 }
 0x84f   :  { %v818_v6 = vpop.f32.mrf.mxu2 }
 0x850   :  { %865 = vrot.lane.b32.xlu0 %v818_v6, %s3198_s4 }
 0x858   :  { %859 = vrot.lane.b32.xlu0 %v2762_v16, %s2436_s8 }
 0x8c2   :  { %v866_v13 = vpop.permute.xlu0 %865 }
 0x8c3   :  { %v877_v14 = vsel %vm876_vm0, %v874_v12, %v866_v13 }
 0x8c4   :  { %2166 = vmatmul.msk.f32.vlgmr.msrb.gmra.mxu3 %vm112_vm4, %v877_v14 }
 0x8ca   :  { %v860_v16 = vpop.permute.xlu0 %859 }
 0x8cb   :  { %v875_v18 = vsel %vm873_vm15, %v872_v15, %v860_v16 }
 0x8cc   :  { %v878_v19 = vsel %vm876_vm0, %v875_v18, %v868_v17  ;;  %v1098_v18 = vld [vmem:[%s3184_s17 + $0x38] sm:$0xff] }
 0x8cd   :  { %2167 = vmatmul.msk.f32.gmra.mxu3 %vm112_vm4, %v878_v19  ;;  %1118 = vmatpush.msrb.mxu2 %v1098_v18  ;;  %v2438_v18 = vmov -1.0  }
 0x947   :  { %v910_v20 = vpop.f32.mrf.mxu3 }
 0x948   :  { %v911_v21 = vadd.f32 %v2278_v3, %v910_v20 }
 0x94a   :  { %v916_v22 = vadd.f32 %v911_v21, %v2653_v36  ;;  %v1096_v21 = vld [vmem:[%s3184_s17 + $0x28] sm:$0xff] }
 0x94c   :  { %v920_v23 = vsel %vm112_vm4, %v916_v22, 0.0 }
 0x94d   :  { %921 = vadd.xlane.f32.xlu0 %v920_v23  ;;  %v1095_v23 = vld [vmem:[%s3184_s17 + $0x20] sm:$0xff] }
 0x950   :  { %v913_v34 = vpop.f32.mrf.mxu3 }
 0x951   :  { %v914_v24 = vadd.f32 %v2278_v3, %v913_v34  ;;  %v1097_v3 = vld [vmem:[%s3184_s17 + $0x30] sm:$0xff] }
 0x952   :  { %1119 = vmatpush.msrb.mxu2 %v1097_v3 }
 0x953   :  { %v917_v25 = vadd.f32 %v914_v24, %v2657_v41  ;;  %v977_v41 = vld [vmem:[%s3182_s15 + $0x18] sm:$0xff] }
 0x954   :  { %1000 = vmatpush.msrb.mxu0 %v977_v41  ;;  %1120 = vmatpush.msrb.mxu2 %v1096_v21 }
 0x955   :  { %v923_v26 = vsel %vm112_vm4, %v917_v25, 0.0 }
 0x956   :  { %924 = vadd.xlane.f32.xlu2 %v923_v26  ;;  %1001 = vmatpush.msrb.mxu0 %v976_v39 }
 0x957   :  { %1121 = vmatpush.msrb.mxu2 %v1095_v23 }
 0x958   :  { %1002 = vmatpush.msrb.mxu0 %v975_v40 }
 0x95a   :  { %1003 = vmatpush.msrb.mxu0 %v974_v42 }
 0x9c0   :  { %v922_v27 = vpop.xlane.xlu0 %921 }
 0x9c1   :  { %v926_v28 = vmul.f32 %v922_v27, %v2627_v63 }
 0x9c3   :  { %v928_v29 = vsub.f32 %v916_v22, %v926_v28  ;;  %v1093_v28 = vld [vmem:[%s3184_s17 + $0x10] sm:$0xff] }
 0x9c5   :  { %v930_v30 = vmul.f32 %v928_v29, %v928_v29 }
 0x9c7   :  { %v932_v31 = vsel %vm112_vm4, %v930_v30, 0.0 }
 0x9c8   :  { %933 = vadd.xlane.f32.xlu1 %v932_v31  ;;  %v1092_v31 = vld [vmem:[%s3184_s17 + $0x8] sm:$0xff] }
 0x9c9   :  { %v925_v32 = vpop.xlane.xlu2 %924 }
 0x9ca   :  { %v927_v36 = vmul.f32 %v925_v32, %v2627_v63 }
 0x9cc   :  { %v929_v33 = vsub.f32 %v917_v25, %v927_v36  ;;  %v1094_v25 = vld [vmem:[%s3184_s17 + $0x18] sm:$0xff] }
 0x9cd   :  { %1122 = vmatpush.msrb.mxu2 %v1094_v25 }
 0x9ce   :  { %v931_v37 = vmul.f32 %v929_v33, %v929_v33 }
 0x9cf   :  { %1123 = vmatpush.msrb.mxu2 %v1093_v28 }
 0x9d0   :  { %v935_v38 = vsel %vm112_vm4, %v931_v37, 0.0 }
 0x9d1   :  { %936 = vadd.xlane.f32.xlu1 %v935_v38  ;;  %1124 = vmatpush.msrb.mxu2 %v1092_v31 }
 0xa3b   :  { %v934_v43 = vpop.xlane.xlu1 %933 }
 0xa3c   :  { %v938_v45 = vmul.f32 %v934_v43, %v2627_v63 }
 0xa3e   :  { %v940_v47 = vadd.f32 1e-12, %v938_v45 }
 0xa40   :  { %2331 = vrsqrt.f32 %v940_v47  ;;  %vm948_vm2 = vweird.f32 %v940_v47 }
 0xa44   :  { %v937_v48 = vpop.xlane.xlu1 %936 }
 0xa45   :  { %v939_v49 = vmul.f32 %v937_v48, %v2627_v63 }
 0xa46   :  { %v2332_v50 = vpop.eup %2331 }
 0xa47   :  { %v943_v51 = vmul.f32 %v2332_v50, %v940_v47  ;;  %v941_v52 = vadd.f32 1e-12, %v939_v49  ;;  %vm949_vm1 = vweird.f32 %v2332_v50 }
 0xa48   :  { %vm950_vm3 = vmor %vm948_vm2, %vm949_vm1 }
 0xa49   :  { %v944_v53 = vmul.f32 %v2332_v50, %v943_v51  ;;  %2333 = vrsqrt.f32 %v941_v52  ;;  %vm958_vm6 = vweird.f32 %v941_v52 }
 0xa4b   :  { %v945_v54 = vmul.f32 0.5, %v944_v53 }
 0xa4d   :  { %v946_v46 = vsub.f32 1.5, %v945_v54 }
 0xa4f   :  { %v2334_v55 = vpop.eup %2333  ;;  %v947_v56 = vmul.f32 %v2332_v50, %v946_v46 }
 0xa50   :  { %v953_v58 = vmul.f32 %v2334_v55, %v941_v52  ;;  %vm959_vm5 = vweird.f32 %v2334_v55 }
 0xa51   :  { %v951_v59 = vsel %vm950_vm3, %v2332_v50, %v947_v56  ;;  %vm960_vm7 = vmor %vm958_vm6, %vm959_vm5  ;;  %vm1103_vm5 = vcmask 523264  }
 0xa52   :  { %v962_v62 = vmul.f32 %v951_v59, %v928_v29  ;;  %v954_v0 = vmul.f32 %v2334_v55, %v953_v58 }
 0xa54   :  { %v967_v2 = vmul.f32 %v2279_v57, %v962_v62  ;;  %v955_v44 = vmul.f32 0.5, %v954_v0 }
 0xa56   :  { %v956_v35 = vsub.f32 1.5, %v955_v44  ;;  %v2841_v4 = vadd.f32 %v2280_v1, %v967_v2 }
 0xa58   :  { %v957_v5 = vmul.f32 %v2334_v55, %v956_v35  ;;  %2168 = vmatmul.msk.f32.vlgmr.msrb.gmra.mxu0 %vm112_vm4, %v2841_v4 }
 0xa5a   :  { %v961_v6 = vsel %vm960_vm7, %v2334_v55, %v957_v5 }
 0xa5b   :  { %v963_v7 = vmul.f32 %v961_v6, %v929_v33  ;;  %v1091_v33 = vld [vmem:[%s3184_s17] sm:$0xff] }
 0xa5c   :  { %1125 = vmatpush.msrb.mxu2 %v1091_v33 }
 0xa5d   :  { %v968_v8 = vmul.f32 %v2279_v57, %v963_v7 }
 0xa5f   :  { %v2845_v9 = vadd.f32 %v2280_v1, %v968_v8 }
 0xa61   :  { %2169 = vmatmul.msk.f32.gmra.mxu0 %vm112_vm4, %v2845_v9 }
 0xad5   :  { %v1005_v11 = vpop.f32.mrf.mxu0 }
 0xad6   :  { %v2852_v12 = vadd.f32 %v2281_v10, %v1005_v11 }
 0xad8   :  { %v2855_v13 = vmul.f32 0.70710677, %v2852_v12 }
 0xada   :  { %v1019_v14 = vand.u32 2147483647, %v2855_v13  ;;  %vm1015_vm3 = vcmp.ge.f32.partialorder %v2855_v13, 0.0 }
 0xadb   :  { %v1017_v3 = vsel %vm1015_vm3, 1.0, %v2438_v18 }
 0xadc   :  { %v1021_v15 = vmul.f32 0.3275911, %v1019_v14  ;;  %v1073_v42 = vsub.f32 0.0, %v1019_v14 }
 0xade   :  { %v1023_v16 = vadd.f32 1.0, %v1021_v15  ;;  %v1008_v17 = vpop.f32.mrf.mxu0  ;;  %v1075_v50 = vmul.f32 %v1073_v42, %v1019_v14 }
 0xadf   :  { %v2861_v19 = vadd.f32 %v2281_v10, %v1008_v17 }
 0xae0   :  { %2335 = vrcp.f32 %v1023_v16  ;;  %v1036_v30 = vand.u32 2147483648, %v1023_v16  ;;  %v1034_v36 = vand.u32 2147483647, %v1023_v16  ;;  %vm1030_vm9 = vweird.f32 %v1023_v16 }
 0xae1   :  { %v2867_v20 = vmul.f32 0.70710677, %v2861_v19  ;;  %v1077_v56 = vmul.f32 1.442695, %v1075_v50  ;;  %v1012_v31 = vmul.f32 0.5, %v2861_v19 }
 0xae2   :  { %v1037_v38 = vor.u32 1.1754944e-38, %v1036_v30  ;;  %vm1035_vm11 = vcmp.eq.f32.partialorder %v1034_v36, 8.507059e+37 }
 0xae3   :  { %v1020_v22 = vand.u32 2147483647, %v2867_v20  ;;  %vm1016_vm6 = vcmp.ge.f32.partialorder %v2867_v20, 0.0 }
 0xae5   :  { %v1022_v34 = vmul.f32 0.3275911, %v1020_v22  ;;  %v1074_v59 = vsub.f32 0.0, %v1020_v22 }
 0xae6   :  { %v2336_v24 = vpop.eup %2335 }
 0xae7   :  { %v1026_v26 = vmul.f32 %v2336_v24, %v1023_v16  ;;  %v1024_v27 = vadd.f32 1.0, %v1022_v34  ;;  %vm1031_vm8 = vweird.f32 %v2336_v24  ;;  %v1076_v35 = vmul.f32 %v1074_v59, %v1020_v22 }
 0xae8   :  { %vm1032_vm10 = vmor %vm1030_vm9, %vm1031_vm8  ;;  %v1011_v22 = vmul.f32 0.5, %v2852_v12  ;;  %v2282_v12 = vld [vmem:[%s3185_s18] ss:$0 sm:$0xff] }
 0xae9   :  { %v1027_v29 = vsub.f32 1.0, %v1026_v26  ;;  %2337 = vrcp.f32 %v1024_v27  ;;  %v1051_v49 = vand.u32 2147483648, %v1024_v27  ;;  %v1049_v52 = vand.u32 2147483647, %v1024_v27 }
 0xaea   :  { %vm1045_vm13 = vweird.f32 %v1024_v27  ;;  %2339 = vpow2.f32 %v1077_v56  ;;  %v1079_v10 = vmul.f32 1.442695, %v1076_v35 }
 0xaeb   :  { %v1028_v32 = vmul.f32 %v2336_v24, %v1027_v29  ;;  %v1052_v55 = vor.u32 1.1754944e-38, %v1051_v49  ;;  %vm1050_vm2 = vcmp.eq.f32.partialorder %v1049_v52, 8.507059e+37  ;;  %v1018_v29 = vsel %vm1016_vm6, 1.0, %v2438_v18 }
 0xaec   :  { %2341 = vpow2.f32 %v1079_v10 }
 0xaed   :  { %v1029_v37 = vadd.f32 %v2336_v24, %v1028_v32 }
 0xaef   :  { %v2338_v41 = vpop.eup %2337  ;;  %v1033_v39 = vsel %vm1032_vm10, %v2336_v24, %v1029_v37 }
 0xaf0   :  { %v1038_v40 = vsel %vm1035_vm11, %v1037_v38, %v1033_v39  ;;  %v1041_v43 = vmul.f32 %v2338_v41, %v1024_v27  ;;  %vm1046_vm12 = vweird.f32 %v2338_v41  ;;  %v2340_v11 = vpop.eup %2339 }
 0xaf1   :  { %v1055_v45 = vmul.f32 1.0614054, %v1038_v40  ;;  %vm1047_vm1 = vmor %vm1045_vm13, %vm1046_vm12 }
 0xaf2   :  { %v1042_v47 = vsub.f32 1.0, %v1041_v43  ;;  %v2342_v26 = vpop.eup %2341 }
 0xaf3   :  { %v1057_v48 = vadd.f32 -1.4531521, %v1055_v45 }
 0xaf4   :  { %v1043_v51 = vmul.f32 %v2338_v41, %v1042_v47 }
 0xaf5   :  { %v1059_v53 = vmul.f32 %v1057_v48, %v1038_v40 }
 0xaf6   :  { %v1044_v54 = vadd.f32 %v2338_v41, %v1043_v51 }
 0xaf7   :  { %v1061_v46 = vadd.f32 1.4214138, %v1059_v53  ;;  %v2174_v53 = vld [vmem:[%s3176_s9 + $0x30] sm:$0xff] }
 0xaf8   :  { %v1048_v57 = vsel %vm1047_vm1, %v2338_v41, %v1044_v54  ;;  %v2173_v54 = vld [vmem:[%s3176_s9 + $0x28] sm:$0xff] }
 0xaf9   :  { %v1063_v58 = vmul.f32 %v1061_v46, %v1038_v40  ;;  %v1053_v62 = vsel %vm1050_vm2, %v1052_v55, %v1048_v57  ;;  %v2172_v46 = vld [vmem:[%s3176_s9 + $0x20] sm:$0xff] }
 0xafa   :  { %v1056_v0 = vmul.f32 1.0614054, %v1053_v62 }
 0xafb   :  { %v1065_v1 = vadd.f32 -0.28449672, %v1063_v58 }
 0xafc   :  { %v1058_v2 = vadd.f32 -1.4531521, %v1056_v0 }
 0xafd   :  { %v1067_v44 = vmul.f32 %v1065_v1, %v1038_v40 }
 0xafe   :  { %v1060_v5 = vmul.f32 %v1058_v2, %v1053_v62 }
 0xaff   :  { %v1069_v6 = vadd.f32 0.2548296, %v1067_v44 }
 0xb00   :  { %v1062_v7 = vadd.f32 1.4214138, %v1060_v5 }
 0xb01   :  { %v1071_v8 = vmul.f32 %v1069_v6, %v1038_v40 }
 0xb02   :  { %v1064_v14 = vmul.f32 %v1062_v7, %v1053_v62  ;;  %v2283_v7 = vld [vmem:[%s3186_s19] ss:$0 sm:$0xff] }
 0xb03   :  { %v1081_v15 = vmul.f32 %v2340_v11, %v1071_v8 }
 0xb04   :  { %v1066_v16 = vadd.f32 -0.28449672, %v1064_v14 }
 0xb05   :  { %v1083_v17 = vsub.f32 1.0, %v1081_v15  ;;  %v2284_v15 = vld [vmem:[%s3187_s20] ss:$0 sm:$0xff] }
 0xb06   :  { %v1068_v21 = vmul.f32 %v1066_v16, %v1053_v62 }
 0xb07   :  { %v1085_v23 = vmul.f32 %v1083_v17, %v1017_v3 }
 0xb08   :  { %v1070_v34 = vadd.f32 0.2548296, %v1068_v21 }
 0xb09   :  { %v1087_v24 = vadd.f32 1.0, %v1085_v23 }
 0xb0a   :  { %v1072_v25 = vmul.f32 %v1070_v34, %v1053_v62 }
 0xb0b   :  { %v1089_v27 = vmul.f32 %v1087_v24, %v1011_v22 }
 0xb0c   :  { %v1082_v13 = vmul.f32 %v2342_v26, %v1072_v25  ;;  %v2285_v26 = vld [vmem:[%s3177_s10 + $0x1] ss:$0 sm:$0xff]  ;;  %s3212_s10 = smov 40  }
 0xb0d   :  { %2170 = vmatmul.msk.f32.vlgmr.msrb.gmra.mxu2 %vm1103_vm5, %v1089_v27 }
 0xb0e   :  { %v1084_v28 = vsub.f32 1.0, %v1082_v13 }
 0xb10   :  { %v1086_v30 = vmul.f32 %v1084_v28, %v1018_v29 }
 0xb12   :  { %v1088_v32 = vadd.f32 1.0, %v1086_v30 }
 0xb14   :  { %v1090_v36 = vmul.f32 %v1088_v32, %v1012_v31 }
 0xb16   :  { %2171 = vmatmul.msk.f32.gmra.mxu2 %vm1103_vm5, %v1090_v36 }
 0xb90   :  { %v1127_v33 = vpop.f32.mrf.mxu2 }
 0xb91   :  { %v1128_v37 = vadd.f32 %v2282_v12, %v1127_v33 }
 0xb93   :  { %v1133_v20 = vadd.f32 %v1128_v37, %v2841_v4 }
 0xb95   :  { %v1137_v38 = vsel %vm112_vm4, %v1133_v20, 0.0 }
 0xb96   :  { %1138 = vadd.xlane.f32.xlu1 %v1137_v38 }
 0xb99   :  { %v1130_v41 = vpop.f32.mrf.mxu2 }
 0xb9a   :  { %v1131_v39 = vadd.f32 %v2282_v12, %v1130_v41 }
 0xb9c   :  { %v1134_v40 = vadd.f32 %v1131_v39, %v2845_v9  ;;  %v2175_v9 = vld [vmem:[%s3176_s9 + $0x38] sm:$0xff] }
 0xb9d   :  { %1219 = vmatpush.msra.mxu1 %v2175_v9 }
 0xb9e   :  { %v1140_v19 = vsel %vm112_vm4, %v1134_v40, 0.0 }
 0xb9f   :  { %1141 = vadd.xlane.f32.xlu1 %v1140_v19  ;;  %1220 = vmatpush.msra.mxu1 %v2174_v53 }
 0xba1   :  { %1221 = vmatpush.msra.mxu1 %v2173_v54 }
 0xba3   :  { %1222 = vmatpush.msra.mxu1 %v2172_v46 }
 0xc09   :  { %v1139_v42 = vpop.xlane.xlu1 %1138 }
 0xc0a   :  { %v1143_v43 = vmul.f32 %v1139_v42, %v2627_v63 }
 0xc0c   :  { %v1145_v45 = vsub.f32 %v1133_v20, %v1143_v43 }
 0xc0e   :  { %v1147_v47 = vmul.f32 %v1145_v45, %v1145_v45 }
 0xc10   :  { %v1149_v48 = vsel %vm112_vm4, %v1147_v47, 0.0 }
 0xc11   :  { %1150 = vadd.xlane.f32.xlu0 %v1149_v48 }
 0xc12   :  { %v1142_v49 = vpop.xlane.xlu1 %1141 }
 0xc13   :  { %v1144_v4 = vmul.f32 %v1142_v49, %v2627_v63 }
 0xc15   :  { %v1146_v50 = vsub.f32 %v1134_v40, %v1144_v4 }
 0xc17   :  { %v1148_v51 = vmul.f32 %v1146_v50, %v1146_v50 }
 0xc19   :  { %v1152_v52 = vsel %vm112_vm4, %v1148_v51, 0.0 }
 0xc1a   :  { %1153 = vadd.xlane.f32.xlu2 %v1152_v52 }
 0xc84   :  { %v1151_v55 = vpop.xlane.xlu0 %1150 }
 0xc85   :  { %v1155_v56 = vmul.f32 %v1151_v55, %v2627_v63 }
 0xc87   :  { %v1157_v57 = vadd.f32 1e-12, %v1155_v56 }
 0xc89   :  { %2343 = vrsqrt.f32 %v1157_v57  ;;  %vm1165_vm8 = vweird.f32 %v1157_v57 }
 0xc8d   :  { %v1154_v58 = vpop.xlane.xlu2 %1153 }
 0xc8e   :  { %v1156_v59 = vmul.f32 %v1154_v58, %v2627_v63 }
 0xc8f   :  { %v2344_v62 = vpop.eup %2343 }
 0xc90   :  { %v1160_v0 = vmul.f32 %v2344_v62, %v1157_v57  ;;  %v1158_v1 = vadd.f32 1e-12, %v1156_v59  ;;  %vm1166_vm7 = vweird.f32 %v2344_v62 }
 0xc91   :  { %vm1167_vm9 = vmor %vm1165_vm8, %vm1166_vm7 }
 0xc92   :  { %v1161_v2 = vmul.f32 %v2344_v62, %v1160_v0  ;;  %2345 = vrsqrt.f32 %v1158_v1  ;;  %vm1175_vm11 = vweird.f32 %v1158_v1 }
 0xc94   :  { %v1162_v44 = vmul.f32 0.5, %v1161_v2 }
 0xc96   :  { %v1163_v35 = vsub.f32 1.5, %v1162_v44 }
 0xc98   :  { %v2346_v5 = vpop.eup %2345  ;;  %v1164_v6 = vmul.f32 %v2344_v62, %v1163_v35 }
 0xc99   :  { %v1170_v8 = vmul.f32 %v2346_v5, %v1158_v1  ;;  %vm1176_vm10 = vweird.f32 %v2346_v5 }
 0xc9a   :  { %v1168_v10 = vsel %vm1167_vm9, %v2344_v62, %v1164_v6  ;;  %vm1177_vm12 = vmor %vm1175_vm11, %vm1176_vm10 }
 0xc9b   :  { %v1179_v11 = vmul.f32 %v1168_v10, %v1145_v45  ;;  %v1171_v14 = vmul.f32 %v2346_v5, %v1170_v8 }
 0xc9d   :  { %v1184_v16 = vmul.f32 %v2283_v7, %v1179_v11  ;;  %v1172_v17 = vmul.f32 0.5, %v1171_v14 }
 0xc9f   :  { %v1173_v3 = vsub.f32 1.5, %v1172_v17  ;;  %v2927_v21 = vadd.f32 %v2284_v15, %v1184_v16 }
 0xca1   :  { %v1174_v23 = vmul.f32 %v2346_v5, %v1173_v3  ;;  %2177 = vmatmul.msk.f32.vlgmr.msra.gmra.mxu1 %vm112_vm4, %v2927_v21 }
 0xca3   :  { %v1178_v34 = vsel %vm1177_vm12, %v2346_v5, %v1174_v23 }
 0xca4   :  { %v1180_v22 = vmul.f32 %v1178_v34, %v1146_v50 }
 0xca6   :  { %v1185_v24 = vmul.f32 %v2283_v7, %v1180_v22 }
 0xca8   :  { %v2931_v25 = vadd.f32 %v2284_v15, %v1185_v24 }
 0xcaa   :  { %2178 = vmatmul.msk.f32.gmra.mxu1 %vm112_vm4, %v2931_v25 }
 0xd1e   :  { %v1224_v27 = vpop.f32.mrf.mxu1 }
 0xd1f   :  { %v2938_v13 = vadd.f32 %v2285_v26, %v1224_v27 }
 0xd21   :  { %1231 = vrot.lane.b32.xlu1 %v2938_v13, %s2424_s28 }
 0xd27   :  { %v1227_v28 = vpop.f32.mrf.mxu1 }
 0xd28   :  { %v2942_v29 = vadd.f32 %v2285_v26, %v1227_v28 }
 0xd29   :  { %1364 = vrot.lane.b32.xlu1 %v2938_v13, %s2425_s6 }
 0xd2a   :  { %1392 = vrot.lane.b32.xlu2 %v2942_v29, %s2425_s6  ;;  %1258 = vrot.lane.b32.xlu0 %v2942_v29, %s2424_s28  ;;  %v2255_v16 = vpack.i.bf16 %v2942_v29, %v2938_v13  ;;  %s3213_s28 = smov 56   ;;  %s3214_s6 = smov 8  }
 0xd31   :  { %1524 = vrot.lane.b32.xlu1 %v2942_v29, %s2428_s24 }
 0xd32   :  { %1362 = vrot.lane.b32.xlu2 %v2938_v13, %s2426_s29  ;;  %1390 = vrot.lane.b32.xlu0 %v2942_v29, %s2426_s29  ;;  %s3215_s29 = smov 24  }
 0xd39   :  { %1660 = vrot.lane.b32.xlu1 %v2942_v29, %s2431_s0 }
 0xd3a   :  { %1498 = vrot.lane.b32.xlu2 %v2938_v13, %s2429_s2  ;;  %1526 = vrot.lane.b32.xlu0 %v2942_v29, %s2429_s2 }
 0xd41   :  { %1630 = vrot.lane.b32.xlu1 %v2938_v13, %s2433_s27 }
 0xd42   :  { %1658 = vrot.lane.b32.xlu2 %v2942_v29, %s2433_s27  ;;  %1496 = vrot.lane.b32.xlu0 %v2938_v13, %s2428_s24 }
 0xd4a   :  { %1632 = vrot.lane.b32.xlu0 %v2938_v13, %s2431_s0 }
 0xd84   :  { %v1393_v30 = vpop.permute.xlu2 %1392 }
 0xd85   :  { %2187 = vmatpush.xpose.msk.msra.mxu2 %vm309_vm14, %v1393_v30 }
 0xd8c   :  { %v1363_v32 = vpop.permute.xlu2 %1362 }
 0xd93   :  { %v1232_v31 = vpop.permute.xlu1 %1231 }
 0xd94   :  { %2179 = vmatpush.xpose.msk.msra.mxu3 %vm309_vm14, %v1232_v31  ;;  %v1499_v33 = vpop.permute.xlu2 %1498 }
 0xd97   :  { %2180 = vmatmul.msk.f32.vlgmr.msra.gmra.mxu3 %vm309_vm14, %v2938_v13 }
 0xd9b   :  { %v1365_v36 = vpop.permute.xlu1 %1364 }
 0xd9c   :  { %v1259_v12 = vpop.permute.xlu0 %1258  ;;  %v1659_v40 = vpop.permute.xlu2 %1658 }
 0xd9d   :  { %2181 = vmatpush.xpose.msk.msra.mxu0 %vm309_vm14, %v1259_v12 }
 0xda0   :  { %2182 = vmatmul.msk.f32.vlgmr.msra.gmra.mxu0 %vm309_vm14, %v2942_v29 }
 0xda1   :  { %2185 = vmatpush.xpose.msk.msrb.mxu0 %vm309_vm14, %v1365_v36 }
 0xda3   :  { %v1525_v37 = vpop.permute.xlu1 %1524 }
 0xda4   :  { %v1391_v20 = vpop.permute.xlu0 %1390 }
 0xda5   :  { %2191 = vmatpush.xpose.msk.msra.mxu0 %vm309_vm14, %v1499_v33  ;;  %2188 = vmatmul.msk.f32.vlgmr.msra.gmra.mxu2 %vm309_vm14, %v1391_v20 }
 0xda8   :  { %2186 = vmatmul.msk.f32.vlgmr.msrb.gmra.mxu0 %vm309_vm14, %v1363_v32 }
 0xdab   :  { %v1661_v41 = vpop.permute.xlu1 %1660 }
 0xdac   :  { %v1527_v38 = vpop.permute.xlu0 %1526 }
 0xdad   :  { %2193 = vmatpush.xpose.msk.msrb.mxu2 %vm309_vm14, %v1527_v38 }
 0xdb0   :  { %2194 = vmatmul.msk.f32.vlgmr.msrb.gmra.mxu2 %vm309_vm14, %v1525_v37 }
 0xdb1   :  { %2199 = vmatpush.xpose.msk.msra.mxu2 %vm309_vm14, %v1661_v41 }
 0xdb3   :  { %v1631_v42 = vpop.permute.xlu1 %1630 }
 0xdb4   :  { %v1497_v39 = vpop.permute.xlu0 %1496 }
 0xdb5   :  { %2192 = vmatmul.msk.f32.vlgmr.msra.gmra.mxu0 %vm309_vm14, %v1497_v39 }
 0xdb8   :  { %2200 = vmatmul.msk.f32.vlgmr.msra.gmra.mxu2 %vm309_vm14, %v1659_v40 }
 0xdbc   :  { %v1633_v19 = vpop.permute.xlu0 %1632 }
 0xdbd   :  { %2197 = vmatpush.xpose.msk.msrb.mxu0 %vm309_vm14, %v1633_v19 }
 0xdc0   :  { %2198 = vmatmul.msk.f32.vlgmr.msrb.gmra.mxu0 %vm309_vm14, %v1631_v42 }
 0xe1a   :  { %v1254_v43 = vpop.f32.mrf.mxu3 }
 0xe1b   :  { %v1284_v45 = vmul.f32 0.35355338, %v1254_v43 }
 0xe1d   :  { %v1281_v47 = vpop.f32.mrf.mxu0  ;;  %v1286_v48 = vadd.f32 %v1284_v45, %v2690_v60 }
 0xe1e   :  { %v1285_v49 = vmul.f32 0.35355338, %v1281_v47 }
 0xe1f   :  { %v1288_v4 = vsel %vm309_vm14, %v1286_v48, -inf }
 0xe20   :  { %1289 = vmax.xlane.f32.xlu2 %v1288_v4  ;;  %v1287_v50 = vadd.f32 %v1285_v49, %v2692_v61 }
 0xe22   :  { %v1291_v51 = vsel %vm309_vm14, %v1287_v50, -inf }
 0xe23   :  { %1292 = vmax.xlane.f32.xlu0 %v1291_v51 }
 0xe25   :  { %v1387_v52 = vpop.f32.mrf.mxu0 }
 0xe26   :  { %v1418_v9 = vmul.f32 0.35355338, %v1387_v52 }
 0xe28   :  { %v1415_v53 = vpop.f32.mrf.mxu2  ;;  %v1420_v54 = vadd.f32 %v1418_v9, %v2690_v60 }
 0xe29   :  { %v1419_v46 = vmul.f32 0.35355338, %v1415_v53 }
 0xe2a   :  { %v1422_v55 = vsel %vm309_vm14, %v1420_v54, -inf }
 0xe2b   :  { %1423 = vmax.xlane.f32.xlu1 %v1422_v55  ;;  %v1421_v56 = vadd.f32 %v1419_v46, %v2692_v61 }
 0xe2d   :  { %v1425_v57 = vsel %vm309_vm14, %v1421_v56, -inf }
 0xe2e   :  { %1426 = vmax.xlane.f32.xlu2 %v1425_v57 }
 0xe32   :  { %v1521_v58 = vpop.f32.mrf.mxu0 }
 0xe33   :  { %v1552_v59 = vmul.f32 0.35355338, %v1521_v58  ;;  %v1549_v62 = vpop.f32.mrf.mxu2 }
 0xe34   :  { %v1553_v0 = vmul.f32 0.35355338, %v1549_v62 }
 0xe35   :  { %v1554_v1 = vadd.f32 %v1552_v59, %v2690_v60 }
 0xe36   :  { %v1555_v2 = vadd.f32 %v1553_v0, %v2692_v61 }
 0xe37   :  { %v1556_v44 = vsel %vm309_vm14, %v1554_v1, -inf }
 0xe38   :  { %1557 = vmax.xlane.f32.xlu0 %v1556_v44  ;;  %v1559_v35 = vsel %vm309_vm14, %v1555_v2, -inf }
 0xe39   :  { %1560 = vmax.xlane.f32.xlu1 %v1559_v35 }
 0xe3b   :  { %v1683_v5 = vpop.f32.mrf.mxu2 }
 0xe3c   :  { %v1687_v6 = vmul.f32 0.35355338, %v1683_v5 }
 0xe3d   :  { %v1655_v7 = vpop.f32.mrf.mxu0 }
 0xe3e   :  { %v1686_v8 = vmul.f32 0.35355338, %v1655_v7  ;;  %v1689_v10 = vadd.f32 %v1687_v6, %v2692_v61 }
 0xe40   :  { %v1693_v11 = vsel %vm309_vm14, %v1689_v10, -inf  ;;  %v1688_v14 = vadd.f32 %v1686_v8, %v2690_v60 }
 0xe41   :  { %1694 = vmax.xlane.f32.xlu0 %v1693_v11 }
 0xe42   :  { %v1690_v15 = vsel %vm309_vm14, %v1688_v14, -inf }
 0xe43   :  { %1691 = vmax.xlane.f32.xlu2 %v1690_v15 }
 0xe52   :  { %2256 = vrot.lane.b32.xlu1 %v2255_v16, %s2427_s1 }
 0xe93   :  { %v1290_v17 = vpop.xlane.xlu2 %1289 }
 0xe94   :  { %v1294_v3 = vsub.f32 %v1286_v48, %v1290_v17 }
 0xe96   :  { %v1296_v23 = vmul.f32 1.442695, %v1294_v3  ;;  %v1293_v34 = vpop.xlane.xlu0 %1292 }
 0xe97   :  { %v1295_v22 = vsub.f32 %v1287_v50, %v1293_v34 }
 0xe98   :  { %2347 = vpow2.f32 %v1296_v23 }
 0xe99   :  { %v1298_v61 = vmul.f32 1.442695, %v1295_v22 }
 0xe9b   :  { %2349 = vpow2.f32 %v1298_v61 }
 0xe9e   :  { %v2348_v24 = vpop.eup %2347  ;;  %v1424_v26 = vpop.xlane.xlu1 %1423 }
 0xe9f   :  { %v1428_v60 = vsub.f32 %v1420_v54, %v1424_v26  ;;  %v1300_v27 = vsel %vm309_vm14, %v2348_v24, 0.0 }
 0xea0   :  { %1301 = vadd.xlane.f32.xlu1 %v1300_v27 }
 0xea1   :  { %v2350_v28 = vpop.eup %2349  ;;  %v1430_v30 = vmul.f32 1.442695, %v1428_v60  ;;  %v1427_v31 = vpop.xlane.xlu2 %1426 }
 0xea2   :  { %v1429_v13 = vsub.f32 %v1421_v56, %v1427_v31  ;;  %v1303_v29 = vsel %vm309_vm14, %v2350_v28, 0.0 }
 0xea3   :  { %2351 = vpow2.f32 %v1430_v30  ;;  %1304 = vadd.xlane.f32.xlu2 %v1303_v29 }
 0xea4   :  { %v1432_v32 = vmul.f32 1.442695, %v1429_v13 }
 0xea6   :  { %2353 = vpow2.f32 %v1432_v32 }
 0xea9   :  { %v2352_v36 = vpop.eup %2351 }
 0xeaa   :  { %v1434_v12 = vsel %vm309_vm14, %v2352_v36, 0.0 }
 0xeab   :  { %1435 = vadd.xlane.f32.xlu0 %v1434_v12  ;;  %v1558_v37 = vpop.xlane.xlu0 %1557 }
 0xeac   :  { %v2354_v33 = vpop.eup %2353  ;;  %v1561_v20 = vpop.xlane.xlu1 %1560  ;;  %v1562_v39 = vsub.f32 %v1554_v1, %v1558_v37 }
 0xead   :  { %v1563_v38 = vsub.f32 %v1555_v2, %v1561_v20  ;;  %v1437_v41 = vsel %vm309_vm14, %v2354_v33, 0.0 }
 0xeae   :  { %1438 = vadd.xlane.f32.xlu2 %v1437_v41  ;;  %v1564_v19 = vmul.f32 1.442695, %v1562_v39 }
 0xeaf   :  { %v1566_v40 = vmul.f32 1.442695, %v1563_v38 }
 0xeb1   :  { %2355 = vpow2.f32 %v1566_v40  ;;  %v2206_v40 = vld [vmem:[%s3178_s11 + $0x38] sm:$0xff] }
 0xeb2   :  { %2357 = vpow2.f32 %v1564_v19  ;;  %v2205_v19 = vld [vmem:[%s3178_s11 + $0x30] sm:$0xff]  ;;  %1822 = vmatpush.msra.mxu0 %v2206_v40 }
 0xeb4   :  { %v1695_v49 = vpop.xlane.xlu0 %1694  ;;  %1823 = vmatpush.msra.mxu0 %v2205_v19 }
 0xeb5   :  { %v1697_v50 = vsub.f32 %v1689_v10, %v1695_v49 }
 0xeb6   :  { %v1692_v42 = vpop.xlane.xlu2 %1691 }
 0xeb7   :  { %v2356_v43 = vpop.eup %2355  ;;  %v1696_v45 = vsub.f32 %v1688_v14, %v1692_v42  ;;  %v1700_v52 = vmul.f32 1.442695, %v1697_v50  ;;  %v2204_v42 = vld [vmem:[%s3178_s11 + $0x28] sm:$0xff] }
 0xeb8   :  { %v1571_v47 = vsel %vm309_vm14, %v2356_v43, 0.0  ;;  %v3013_v4 = vpop.eup %2357  ;;  %1824 = vmatpush.msra.mxu0 %v2204_v42 }
 0xeb9   :  { %2266 = vrot.lane.b32.xlu1 %v2255_v16, %s2432_s26  ;;  %1572 = vadd.xlane.f32.xlu0 %v1571_v47  ;;  %v1698_v48 = vmul.f32 1.442695, %v1696_v45  ;;  %v1568_v51 = vsel %vm309_vm14, %v3013_v4, 0.0 }
 0xebb   :  { %2359 = vpow2.f32 %v1698_v48 }
 0xebc   :  { %2361 = vpow2.f32 %v1700_v52 }
 0xec1   :  { %2271 = vrot.lane.b32.xlu1 %v2255_v16, %s3212_s10  ;;  %1569 = vadd.xlane.f32.xlu0 %v1568_v51  ;;  %v2360_v53 = vpop.eup %2359 }
 0xec2   :  { %v1702_v55 = vsel %vm309_vm14, %v2360_v53, 0.0  ;;  %v2362_v56 = vpop.eup %2361 }
 0xec3   :  { %v1705_v57 = vsel %vm309_vm14, %v2362_v56, 0.0 }
 0xec4   :  { %v2257_v9 = vpop.permute.xlu1 %2256 }
 0xec5   :  { %v2259_v54 = vunpack.i.h.bf16 %v2257_v9  ;;  %v2258_v46 = vunpack.i.l.bf16 %v2257_v9 }
 0xec6   :  { %2261 = vrot.lane.b32.xlu2 %v2255_v16, %s3213_s28 }
 0xec7   :  { %1331 = vmatpush.msrb.mxu1 %v2258_v46  ;;  %1357 = vmatpush.msrb.mxu3 %v2259_v54 }
 0xec9   :  { %1703 = vadd.xlane.f32.xlu0 %v1702_v55  ;;  %v2286_v55 = vld [vmem:[%s3179_s12 + $0x1] ss:$0 sm:$0xff] }
 0xed1   :  { %1706 = vadd.xlane.f32.xlu0 %v1705_v57 }
 0xf13   :  { %v1302_v58 = vpop.xlane.xlu1 %1301 }
 0xf14   :  { %2363 = vrcp.f32 %v1302_v58 }
 0xf16   :  { %v1305_v59 = vpop.xlane.xlu2 %1304 }
 0xf17   :  { %2365 = vrcp.f32 %v1305_v59 }
 0xf1a   :  { %v2364_v62 = vpop.eup %2363 }
 0xf1b   :  { %v1308_v0 = vmul.f32 %v2364_v62, %v2348_v24 }
 0xf1d   :  { %v2366_v1 = vpop.eup %2365  ;;  %2183 = vmatmul.msk.f32.vlgmr.msrb.gmra.mxu1 %vm309_vm14, %v1308_v0 }
 0xf1e   :  { %v1309_v2 = vmul.f32 %v2366_v1, %v2350_v28  ;;  %v1436_v44 = vpop.xlane.xlu0 %1435 }
 0xf1f   :  { %2367 = vrcp.f32 %v1436_v44 }
 0xf20   :  { %2184 = vmatmul.msk.f32.vlgmr.msrb.gmra.mxu3 %vm309_vm14, %v1309_v2 }
 0xf21   :  { %v1439_v35 = vpop.xlane.xlu2 %1438 }
 0xf22   :  { %2369 = vrcp.f32 %v1439_v35 }
 0xf25   :  { %v2368_v5 = vpop.eup %2367 }
 0xf26   :  { %v1442_v11 = vmul.f32 %v2368_v5, %v2352_v36 }
 0xf28   :  { %v2370_v6 = vpop.eup %2369 }
 0xf29   :  { %v2262_v7 = vpop.permute.xlu2 %2261  ;;  %v1443_v14 = vmul.f32 %v2370_v6, %v2354_v33 }
 0xf2a   :  { %v2264_v8 = vunpack.i.h.bf16 %v2262_v7  ;;  %v2263_v10 = vunpack.i.l.bf16 %v2262_v7 }
 0xf2b   :  { %v2267_v15 = vpop.permute.xlu1 %2266 }
 0xf2c   :  { %v2269_v16 = vunpack.i.h.bf16 %v2267_v15  ;;  %v2268_v17 = vunpack.i.l.bf16 %v2267_v15  ;;  %v1573_v3 = vpop.xlane.xlu0 %1572  ;;  %1465 = vmatpush.msra.mxu1 %v2263_v10  ;;  %1491 = vmatpush.msra.mxu3 %v2264_v8  ;;  %v2214_v15 = vld [vmem:[%s3182_s15 + $0x30] sm:$0xff] }
 0xf2d   :  { %2371 = vrcp.f32 %v1573_v3  ;;  %2189 = vmatmul.msk.f32.vlgmr.msra.gmra.mxu1 %vm309_vm14, %v1442_v11  ;;  %2190 = vmatmul.msk.f32.vlgmr.msra.gmra.mxu3 %vm309_vm14, %v1443_v14 }
 0xf2e   :  { %1599 = vmatpush.msrb.mxu1 %v2268_v17  ;;  %1625 = vmatpush.msrb.mxu3 %v2269_v16  ;;  %v2213_v16 = vld [vmem:[%s3182_s15 + $0x28] sm:$0xff]  ;;  %v2212_v17 = vld [vmem:[%s3182_s15 + $0x20] sm:$0xff] }
 0xf33   :  { %v2372_v23 = vpop.eup %2371  ;;  %v2272_v34 = vpop.permute.xlu1 %2271 }
 0xf34   :  { %v1577_v22 = vmul.f32 %v2372_v23, %v2356_v43  ;;  %v2274_v61 = vunpack.i.h.bf16 %v2272_v34  ;;  %v2273_v24 = vunpack.i.l.bf16 %v2272_v34  ;;  %v1570_v26 = vpop.xlane.xlu0 %1569  ;;  %v2203_v43 = vld [vmem:[%s3178_s11 + $0x20] sm:$0xff] }
 0xf35   :  { %2373 = vrcp.f32 %v1570_v26  ;;  %1825 = vmatpush.msra.mxu0 %v2203_v43 }
 0xf36   :  { %2196 = vmatmul.msk.f32.vlgmr.msrb.gmra.mxu3 %vm309_vm14, %v1577_v22  ;;  %1733 = vmatpush.msra.mxu1 %v2273_v24 }
 0xf37   :  { %1759 = vmatpush.msra.mxu3 %v2274_v61 }
 0xf3b   :  { %v2374_v60 = vpop.eup %2373 }
 0xf3c   :  { %v1576_v27 = vmul.f32 %v2374_v60, %v3013_v4  ;;  %v1704_v28 = vpop.xlane.xlu0 %1703 }
 0xf3d   :  { %2375 = vrcp.f32 %v1704_v28 }
 0xf3e   :  { %2195 = vmatmul.msk.f32.vlgmr.msrb.gmra.mxu1 %vm309_vm14, %v1576_v27 }
 0xf43   :  { %v2376_v30 = vpop.eup %2375 }
 0xf44   :  { %v1710_v31 = vmul.f32 %v2376_v30, %v2360_v53  ;;  %v1707_v13 = vpop.xlane.xlu0 %1706 }
 0xf45   :  { %2377 = vrcp.f32 %v1707_v13 }
 0xf46   :  { %2201 = vmatmul.msk.f32.vlgmr.msra.gmra.mxu1 %vm309_vm14, %v1710_v31 }
 0xf4b   :  { %v2378_v29 = vpop.eup %2377 }
 0xf4c   :  { %v1711_v32 = vmul.f32 %v2378_v29, %v2362_v56  ;;  %v2287_v29 = vld [vmem:[%s3180_s13 + $0x1] ss:$0 sm:$0xff]  ;;  %s2123_s13 = sshll.u32 %s3188_s21, 4  ;;  %s2124_s13 = int_to_ptr.hbm [resolvable:$true] %s2123_s13 }
 0xf4e   :  { %2202 = vmatmul.msk.f32.vlgmr.msra.gmra.mxu3 %vm309_vm14, %v1711_v32 }
 0xf9a   :  { %v1333_v36 = vpop.f32.mrf.mxu1 }
 0xfa3   :  { %v1359_v12 = vpop.f32.mrf.mxu3 }
 0xfaa   :  { %v1467_v33 = vpop.f32.mrf.mxu1 }
 0xfab   :  { %1766 = vrot.lane.b32.xlu2 %v1467_v33, %s3214_s6 }
 0xfb0   :  { %v1493_v37 = vpop.f32.mrf.mxu3 }
 0xfb3   :  { %1768 = vrot.lane.b32.xlu2 %v1493_v37, %s3214_s6  ;;  %v2288_v37 = vld [vmem:[%s3181_s14 + $0x1] ss:$0 sm:$0xff] }
 0xfb9   :  { %v1627_v41 = vpop.f32.mrf.mxu3 }
 0xfbb   :  { %v1601_v20 = vpop.f32.mrf.mxu1 }
 0xfbc   :  { %1774 = vrot.lane.b32.xlu0 %v1601_v20, %s2436_s8 }
 0xfc3   :  { %v1735_v38 = vpop.f32.mrf.mxu1 }
 0xfc4   :  { %1782 = vrot.lane.b32.xlu1 %v1735_v38, %s3215_s29 }
 0xfcc   :  { %1776 = vrot.lane.b32.xlu1 %v1627_v41, %s2436_s8 }
 0xfd1   :  { %v1761_v39 = vpop.f32.mrf.mxu3 }
 0xfd2   :  { %1784 = vrot.lane.b32.xlu2 %v1761_v39, %s3215_s29 }
0x1005   :  { %v1767_v45 = vpop.permute.xlu2 %1766 }
0x1006   :  { %v1788_v48 = vsel %vm309_vm14, %v1333_v36, %v1767_v45 }
0x100d   :  { %v1769_v50 = vpop.permute.xlu2 %1768 }
0x100e   :  { %v1789_v52 = vsel %vm309_vm14, %v1359_v12, %v1769_v50 }
0x102c   :  { %v1785_v53 = vpop.permute.xlu2 %1784 }
0x102e   :  { %v1775_v47 = vpop.permute.xlu0 %1774 }
0x102f   :  { %v1790_v49 = vsel %vm873_vm15, %v1788_v48, %v1775_v47  ;;  %v2289_v47 = vld [vmem:[%s3183_s16 + $0x1] ss:$0 sm:$0xff] }
0x1036   :  { %v1783_v4 = vpop.permute.xlu1 %1782 }
0x1037   :  { %v1792_v51 = vsel %vm876_vm0, %v1790_v49, %v1783_v4 }
0x1038   :  { %2208 = vmatmul.msk.f32.vlgmr.msra.gmra.mxu0 %vm112_vm4, %v1792_v51 }
0x103e   :  { %v1777_v9 = vpop.permute.xlu1 %1776 }
0x103f   :  { %v1791_v54 = vsel %vm873_vm15, %v1789_v52, %v1777_v9 }
0x1040   :  { %v1793_v46 = vsel %vm876_vm0, %v1791_v54, %v1785_v53  ;;  %v2226_v53 = vld [vmem:[%s3184_s17 + $0x78] sm:$0xff] }
0x1041   :  { %2209 = vmatmul.msk.f32.gmra.mxu0 %vm112_vm4, %v1793_v46  ;;  %2040 = vmatpush.msrb.mxu1 %v2226_v53  ;;  %v2225_v46 = vld [vmem:[%s3184_s17 + $0x70] sm:$0xff] }
0x1043   :  { %2041 = vmatpush.msrb.mxu1 %v2225_v46 }
0x10b5   :  { %v1827_v56 = vpop.f32.mrf.mxu0 }
0x10b6   :  { %v1828_v57 = vadd.f32 %v2286_v55, %v1827_v56  ;;  %v2224_v56 = vld [vmem:[%s3184_s17 + $0x68] sm:$0xff] }
0x10b7   :  { %2042 = vmatpush.msrb.mxu1 %v2224_v56 }
0x10b8   :  { %v1833_v58 = vadd.f32 %v1828_v57, %v2927_v21 }
0x10ba   :  { %v1839_v59 = vsel %vm112_vm4, %v1833_v58, 0.0 }
0x10bb   :  { %1840 = vadd.xlane.f32.xlu1 %v1839_v59 }
0x10be   :  { %v1830_v62 = vpop.f32.mrf.mxu0 }
0x10bf   :  { %v1831_v0 = vadd.f32 %v2286_v55, %v1830_v62 }
0x10c1   :  { %v1834_v1 = vadd.f32 %v1831_v0, %v2931_v25  ;;  %v2215_v25 = vld [vmem:[%s3182_s15 + $0x38] sm:$0xff] }
0x10c2   :  { %1921 = vmatpush.msrb.mxu2 %v2215_v25  ;;  %v2222_v0 = vld [vmem:[%s3184_s17 + $0x58] sm:$0xff] }
0x10c3   :  { %v1842_v2 = vsel %vm112_vm4, %v1834_v1, 0.0 }
0x10c4   :  { %1843 = vadd.xlane.f32.xlu0 %v1842_v2  ;;  %1922 = vmatpush.msrb.mxu2 %v2214_v15 }
0x10c6   :  { %1923 = vmatpush.msrb.mxu2 %v2213_v16 }
0x10c8   :  { %1924 = vmatpush.msrb.mxu2 %v2212_v17 }
0x112e   :  { %v1841_v44 = vpop.xlane.xlu1 %1840 }
0x112f   :  { %v1845_v35 = vmul.f32 %v1841_v44, %v2627_v63  ;;  %v2221_v44 = vld [vmem:[%s3184_s17 + $0x50] sm:$0xff] }
0x1131   :  { %v1847_v5 = vsub.f32 %v1833_v58, %v1845_v35  ;;  %v2223_v58 = vld [vmem:[%s3184_s17 + $0x60] sm:$0xff] }
0x1132   :  { %2043 = vmatpush.msrb.mxu1 %v2223_v58 }
0x1133   :  { %v1849_v6 = vmul.f32 %v1847_v5, %v1847_v5 }
0x1134   :  { %2044 = vmatpush.msrb.mxu1 %v2222_v0 }
0x1135   :  { %v1851_v7 = vsel %vm112_vm4, %v1849_v6, 0.0  ;;  %v2220_v6 = vld [vmem:[%s3184_s17 + $0x48] sm:$0xff] }
0x1136   :  { %1852 = vadd.xlane.f32.xlu2 %v1851_v7  ;;  %2045 = vmatpush.msrb.mxu1 %v2221_v44 }
0x1137   :  { %v1844_v8 = vpop.xlane.xlu0 %1843 }
0x1138   :  { %v1846_v21 = vmul.f32 %v1844_v8, %v2627_v63  ;;  %2046 = vmatpush.msrb.mxu1 %v2220_v6 }
0x113a   :  { %v1848_v10 = vsub.f32 %v1834_v1, %v1846_v21  ;;  %v2219_v21 = vld [vmem:[%s3184_s17 + $0x40] sm:$0xff] }
0x113b   :  { %2047 = vmatpush.msrb.mxu1 %v2219_v21 }
0x113c   :  { %v1850_v11 = vmul.f32 %v1848_v10, %v1848_v10 }
0x113e   :  { %v1854_v14 = vsel %vm112_vm4, %v1850_v11, 0.0 }
0x113f   :  { %1855 = vadd.xlane.f32.xlu1 %v1854_v14 }
0x11a9   :  { %v1853_v3 = vpop.xlane.xlu2 %1852 }
0x11aa   :  { %v1857_v23 = vmul.f32 %v1853_v3, %v2627_v63 }
0x11ac   :  { %v1859_v34 = vadd.f32 1e-12, %v1857_v23 }
0x11ae   :  { %2379 = vrsqrt.f32 %v1859_v34  ;;  %vm1867_vm15 = vweird.f32 %v1859_v34 }
0x11b2   :  { %v1856_v22 = vpop.xlane.xlu1 %1855 }
0x11b3   :  { %v1858_v61 = vmul.f32 %v1856_v22, %v2627_v63 }
0x11b4   :  { %v2380_v24 = vpop.eup %2379 }
0x11b5   :  { %v1862_v26 = vmul.f32 %v2380_v24, %v1859_v34  ;;  %v1860_v60 = vadd.f32 1e-12, %v1858_v61  ;;  %vm1868_vm14 = vweird.f32 %v2380_v24 }
0x11b6   :  { %vm1869_vm0 = vmor %vm1867_vm15, %vm1868_vm14 }
0x11b7   :  { %v1863_v27 = vmul.f32 %v2380_v24, %v1862_v26  ;;  %2381 = vrsqrt.f32 %v1860_v60  ;;  %vm1877_vm1 = vweird.f32 %v1860_v60 }
0x11b9   :  { %v1864_v28 = vmul.f32 0.5, %v1863_v27 }
0x11bb   :  { %v1865_v30 = vsub.f32 1.5, %v1864_v28 }
0x11bd   :  { %v2382_v31 = vpop.eup %2381  ;;  %v1866_v13 = vmul.f32 %v2380_v24, %v1865_v30 }
0x11be   :  { %v1872_v32 = vmul.f32 %v2382_v31, %v1860_v60  ;;  %vm1878_vm13 = vweird.f32 %v2382_v31 }
0x11bf   :  { %v1870_v36 = vsel %vm1869_vm0, %v2380_v24, %v1866_v13  ;;  %vm1879_vm2 = vmor %vm1877_vm1, %vm1878_vm13 }
0x11c0   :  { %v1881_v12 = vmul.f32 %v1870_v36, %v1847_v5  ;;  %v1873_v33 = vmul.f32 %v2382_v31, %v1872_v32 }
0x11c2   :  { %v1886_v20 = vmul.f32 %v2287_v29, %v1881_v12  ;;  %v1874_v38 = vmul.f32 0.5, %v1873_v33 }
0x11c4   :  { %v1875_v41 = vsub.f32 1.5, %v1874_v38  ;;  %v3087_v39 = vadd.f32 %v2288_v37, %v1886_v20 }
0x11c6   :  { %v1876_v40 = vmul.f32 %v2382_v31, %v1875_v41  ;;  %2217 = vmatmul.msk.f32.vlgmr.msrb.gmra.mxu2 %vm112_vm4, %v3087_v39 }
0x11c8   :  { %v1880_v19 = vsel %vm1879_vm2, %v2382_v31, %v1876_v40 }
0x11c9   :  { %v1882_v42 = vmul.f32 %v1880_v19, %v1848_v10 }
0x11cb   :  { %v1887_v43 = vmul.f32 %v2287_v29, %v1882_v42 }
0x11cd   :  { %v3091_v45 = vadd.f32 %v2288_v37, %v1887_v43 }
0x11cf   :  { %2218 = vmatmul.msk.f32.gmra.mxu2 %vm112_vm4, %v3091_v45 }
0x1249   :  { %v1926_v48 = vpop.f32.mrf.mxu2 }
0x124a   :  { %v3098_v49 = vadd.f32 %v2289_v47, %v1926_v48 }
0x124c   :  { %v3101_v4 = vmul.f32 0.70710677, %v3098_v49 }
0x124e   :  { %v1940_v50 = vand.u32 2147483647, %v3101_v4  ;;  %vm1936_vm14 = vcmp.ge.f32.partialorder %v3101_v4, 0.0 }
0x1250   :  { %v1942_v51 = vmul.f32 0.3275911, %v1940_v50  ;;  %v1994_v16 = vsub.f32 0.0, %v1940_v50 }
0x1252   :  { %v1944_v52 = vadd.f32 1.0, %v1942_v51  ;;  %v1929_v9 = vpop.f32.mrf.mxu2  ;;  %v1996_v61 = vmul.f32 %v1994_v16, %v1940_v50 }
0x1253   :  { %v3107_v54 = vadd.f32 %v2289_v47, %v1929_v9  ;;  %v1938_v9 = vsel %vm1936_vm14, 1.0, %v2438_v18 }
0x1254   :  { %2383 = vrcp.f32 %v1944_v52  ;;  %v1957_v5 = vand.u32 2147483648, %v1944_v52  ;;  %v1955_v8 = vand.u32 2147483647, %v1944_v52  ;;  %vm1951_vm6 = vweird.f32 %v1944_v52 }
0x1255   :  { %v3113_v55 = vmul.f32 0.70710677, %v3107_v54  ;;  %v1998_v31 = vmul.f32 1.442695, %v1996_v61 }
0x1256   :  { %v1958_v11 = vor.u32 1.1754944e-38, %v1957_v5  ;;  %vm1956_vm8 = vcmp.eq.f32.partialorder %v1955_v8, 8.507059e+37 }
0x1257   :  { %v1941_v57 = vand.u32 2147483647, %v3113_v55  ;;  %vm1937_vm15 = vcmp.ge.f32.partialorder %v3113_v55, 0.0 }
0x1259   :  { %v1943_v59 = vmul.f32 0.3275911, %v1941_v57  ;;  %v1995_v32 = vsub.f32 0.0, %v1941_v57 }
0x125a   :  { %v2384_v62 = vpop.eup %2383 }
0x125b   :  { %v1947_v1 = vmul.f32 %v2384_v62, %v1944_v52  ;;  %v1945_v2 = vadd.f32 1.0, %v1943_v59  ;;  %vm1952_vm3 = vweird.f32 %v2384_v62  ;;  %v1997_v38 = vmul.f32 %v1995_v32, %v1941_v57 }
0x125c   :  { %vm1953_vm7 = vmor %vm1951_vm6, %vm1952_vm3  ;;  %v1932_v57 = vmul.f32 0.5, %v3098_v49  ;;  %v2290_v49 = vld [vmem:[%s3185_s18 + $0x1] ss:$0 sm:$0xff] }
0x125d   :  { %v1948_v35 = vsub.f32 1.0, %v1947_v1  ;;  %2385 = vrcp.f32 %v1945_v2  ;;  %v1972_v22 = vand.u32 2147483648, %v1945_v2  ;;  %v1970_v26 = vand.u32 2147483647, %v1945_v2 }
0x125e   :  { %vm1966_vm10 = vweird.f32 %v1945_v2  ;;  %2387 = vpow2.f32 %v1998_v31  ;;  %v2000_v43 = vmul.f32 1.442695, %v1997_v38  ;;  %v2292_v38 = vld [vmem:[%s3187_s20 + $0x1] ss:$0 sm:$0xff]  ;;  %s2440_s20 = smov 128  }
0x125f   :  { %v1949_v7 = vmul.f32 %v2384_v62, %v1948_v35  ;;  %v1973_v30 = vor.u32 1.1754944e-38, %v1972_v22  ;;  %vm1971_vm12 = vcmp.eq.f32.partialorder %v1970_v26, 8.507059e+37  ;;  %v1933_v35 = vmul.f32 0.5, %v3107_v54 }
0x1260   :  { %2389 = vpow2.f32 %v2000_v43 }
0x1261   :  { %v1950_v10 = vadd.f32 %v2384_v62, %v1949_v7 }
0x1263   :  { %v2386_v14 = vpop.eup %2385  ;;  %v1954_v25 = vsel %vm1953_vm7, %v2384_v62, %v1950_v10 }
0x1264   :  { %v1959_v15 = vsel %vm1956_vm8, %v1958_v11, %v1954_v25  ;;  %v1962_v17 = vmul.f32 %v2386_v14, %v1945_v2  ;;  %vm1967_vm9 = vweird.f32 %v2386_v14  ;;  %v2388_v47 = vpop.eup %2387  ;;  %v1939_v2 = vsel %vm1937_vm15, 1.0, %v2438_v18 }
0x1265   :  { %v1976_v3 = vmul.f32 1.0614054, %v1959_v15  ;;  %vm1968_vm11 = vmor %vm1966_vm10, %vm1967_vm9 }
0x1266   :  { %v1963_v23 = vsub.f32 1.0, %v1962_v17  ;;  %v2390_v62 = vpop.eup %2389 }
0x1267   :  { %v1978_v34 = vadd.f32 -1.4531521, %v1976_v3 }
0x1268   :  { %v1964_v24 = vmul.f32 %v2386_v14, %v1963_v23 }
0x1269   :  { %v1980_v60 = vmul.f32 %v1978_v34, %v1959_v15 }
0x126a   :  { %v1965_v27 = vadd.f32 %v2386_v14, %v1964_v24 }
0x126b   :  { %v1982_v28 = vadd.f32 1.4214138, %v1980_v60 }
0x126c   :  { %v1969_v13 = vsel %vm1968_vm11, %v2386_v14, %v1965_v27 }
0x126d   :  { %v1984_v29 = vmul.f32 %v1982_v28, %v1959_v15  ;;  %v1974_v36 = vsel %vm1971_vm12, %v1973_v30, %v1969_v13 }
0x126e   :  { %v1977_v12 = vmul.f32 1.0614054, %v1974_v36 }
0x126f   :  { %v1986_v33 = vadd.f32 -0.28449672, %v1984_v29 }
0x1270   :  { %v1979_v37 = vadd.f32 -1.4531521, %v1977_v12  ;;  %v2291_v12 = vld [vmem:[%s3186_s19 + $0x1] ss:$0 sm:$0xff]  ;;  %s2439_s19 = smov [#allocation2]  }
0x1271   :  { %v1988_v20 = vmul.f32 %v1986_v33, %v1959_v15  ;;  %s2121_s10 = sshll.u32 %s2439_s19, 4  ;;  %s2122_s10 = int_to_ptr.vmem [resolvable:$true] %s2121_s10 }
0x1272   :  { %v1981_v41 = vmul.f32 %v1979_v37, %v1974_v36 }
0x1273   :  { %v1990_v40 = vadd.f32 0.2548296, %v1988_v20 }
0x1274   :  { %v1983_v19 = vadd.f32 1.4214138, %v1981_v41 }
0x1275   :  { %v1992_v42 = vmul.f32 %v1990_v40, %v1959_v15 }
0x1276   :  { %v1985_v48 = vmul.f32 %v1983_v19, %v1974_v36 }
0x1277   :  { %v2002_v50 = vmul.f32 %v2388_v47, %v1992_v42 }
0x1278   :  { %v1987_v51 = vadd.f32 -0.28449672, %v1985_v48 }
0x1279   :  { %v2004_v52 = vsub.f32 1.0, %v2002_v50 }
0x127a   :  { %v1989_v53 = vmul.f32 %v1987_v51, %v1974_v36 }
0x127b   :  { %v2006_v46 = vmul.f32 %v2004_v52, %v1938_v9 }
0x127c   :  { %v1991_v56 = vadd.f32 0.2548296, %v1989_v53 }
0x127d   :  { %v2008_v58 = vadd.f32 1.0, %v2006_v46 }
0x127e   :  { %v1993_v59 = vmul.f32 %v1991_v56, %v1974_v36 }
0x127f   :  { %v2010_v0 = vmul.f32 %v2008_v58, %v1932_v57 }
0x1280   :  { %v2003_v1 = vmul.f32 %v2390_v62, %v1993_v59 }
0x1281   :  { %2228 = vmatmul.msk.f32.vlgmr.msrb.gmra.mxu1 %vm1103_vm5, %v2010_v0 }
0x1282   :  { %v2005_v4 = vsub.f32 1.0, %v2003_v1 }
0x1284   :  { %v2007_v44 = vmul.f32 %v2005_v4, %v1939_v2 }
0x1286   :  { %v2009_v5 = vadd.f32 1.0, %v2007_v44 }
0x1288   :  { %v2011_v6 = vmul.f32 %v2009_v5, %v1933_v35 }
0x128a   :  { %2229 = vmatmul.msk.f32.gmra.mxu1 %vm1103_vm5, %v2011_v6 }
0x12fe   :  { %v2049_v7 = vpop.f32.mrf.mxu1 }
0x12ff   :  { %v2050_v8 = vadd.f32 %v2290_v49, %v2049_v7 }
0x1301   :  { %v2055_v55 = vadd.f32 %v2050_v8, %v3087_v39 }
0x1303   :  { %v2061_v21 = vsel %vm112_vm4, %v2055_v55, 0.0 }
0x1304   :  { %2062 = vadd.xlane.f32.xlu0 %v2061_v21 }
0x1307   :  { %v2052_v10 = vpop.f32.mrf.mxu1 }
0x1308   :  { %v2053_v18 = vadd.f32 %v2290_v49, %v2052_v10 }
0x130a   :  { %v2056_v11 = vadd.f32 %v2053_v18, %v3091_v45 }
0x130c   :  { %v2064_v54 = vsel %vm112_vm4, %v2056_v11, 0.0 }
0x130d   :  { %2065 = vadd.xlane.f32.xlu2 %v2064_v54 }
0x1377   :  { %v2063_v14 = vpop.xlane.xlu0 %2062 }
0x1378   :  { %v2067_v25 = vmul.f32 %v2063_v14, %v2627_v63 }
0x137a   :  { %v2069_v15 = vsub.f32 %v2055_v55, %v2067_v25 }
0x137c   :  { %v2071_v16 = vmul.f32 %v2069_v15, %v2069_v15 }
0x137e   :  { %v2073_v17 = vsel %vm112_vm4, %v2071_v16, 0.0 }
0x137f   :  { %2074 = vadd.xlane.f32.xlu1 %v2073_v17 }
0x1380   :  { %v2066_v3 = vpop.xlane.xlu2 %2065 }
0x1381   :  { %v2068_v39 = vmul.f32 %v2066_v3, %v2627_v63 }
0x1383   :  { %v2070_v23 = vsub.f32 %v2056_v11, %v2068_v39 }
0x1385   :  { %v2072_v34 = vmul.f32 %v2070_v23, %v2070_v23 }
0x1387   :  { %v2076_v22 = vsel %vm112_vm4, %v2072_v34, 0.0 }
0x1388   :  { %2077 = vadd.xlane.f32.xlu0 %v2076_v22 }
0x13f2   :  { %v2075_v45 = vpop.xlane.xlu1 %2074 }
0x13f3   :  { %v2079_v61 = vmul.f32 %v2075_v45, %v2627_v63 }
0x13f5   :  { %v2081_v24 = vadd.f32 1e-12, %v2079_v61 }
0x13f7   :  { %2391 = vrsqrt.f32 %v2081_v24  ;;  %vm2089_vm0 = vweird.f32 %v2081_v24 }
0x13fb   :  { %v2078_v26 = vpop.xlane.xlu0 %2077 }
0x13fc   :  { %v2080_v60 = vmul.f32 %v2078_v26, %v2627_v63 }
0x13fd   :  { %v2392_v27 = vpop.eup %2391 }
0x13fe   :  { %v2084_v28 = vmul.f32 %v2392_v27, %v2081_v24  ;;  %v2082_v30 = vadd.f32 1e-12, %v2080_v60  ;;  %vm2090_vm5 = vweird.f32 %v2392_v27 }
0x13ff   :  { %vm2091_vm13 = vmor %vm2089_vm0, %vm2090_vm5 }
0x1400   :  { %v2085_v31 = vmul.f32 %v2392_v27, %v2084_v28  ;;  %2393 = vrsqrt.f32 %v2082_v30  ;;  %vm2099_vm2 = vweird.f32 %v2082_v30 }
0x1402   :  { %v2086_v13 = vmul.f32 0.5, %v2085_v31 }
0x1404   :  { %v2087_v29 = vsub.f32 1.5, %v2086_v13 }
0x1406   :  { %v2394_v32 = vpop.eup %2393  ;;  %v2088_v36 = vmul.f32 %v2392_v27, %v2087_v29 }
0x1407   :  { %v2094_v33 = vmul.f32 %v2394_v32, %v2082_v30  ;;  %vm2100_vm1 = vweird.f32 %v2394_v32 }
0x1408   :  { %v2092_v37 = vsel %vm2091_vm13, %v2392_v27, %v2088_v36  ;;  %vm2101_vm3 = vmor %vm2099_vm2, %vm2100_vm1 }
0x1409   :  { %v2103_v20 = vmul.f32 %v2092_v37, %v2069_v15  ;;  %v2095_v63 = vmul.f32 %v2394_v32, %v2094_v33 }
0x140b   :  { %v2108_v41 = vmul.f32 %v2291_v12, %v2103_v20  ;;  %v2096_v40 = vmul.f32 0.5, %v2095_v63 }
0x140d   :  { %v2097_v19 = vsub.f32 1.5, %v2096_v40  ;;  %v2113_v42 = vadd.f32 %v2292_v38, %v2108_v41 }
0x140f   :  { %v2098_v43 = vmul.f32 %v2394_v32, %v2097_v19  ;;  %2115 = vst.msk [vmem:[#allocation2] sm:$0xff] %vm112_vm4, %v2113_v42 }
0x1411   :  { %v2102_v47 = vsel %vm2101_vm3, %v2394_v32, %v2098_v43 }
0x1412   :  { %v2104_v48 = vmul.f32 %v2102_v47, %v2070_v23 }
0x1414   :  { %v2109_v50 = vmul.f32 %v2291_v12, %v2104_v48 }
0x1416   :  { %v2114_v51 = vadd.f32 %v2292_v38, %v2109_v50 }
0x1418   :  { %2116 = vst.msk [vmem:[#allocation2 + $0x8] sm:$0xff] %vm112_vm4, %v2114_v51 }
0x1419   :  { %2129 = dma.vmem_to_hbm [thread:$0]  %s2122_s10, 256, %s2124_s13, [#allocation3], %s2440_s20, %s2440_s20, %s3214_s6  }
0x141a   :  { %2419 = dma.done.wait [#allocation3], 256  }
0x141b   :  { %2420 = vsyncadd [#allocation3], 4294967040 }
0x141c   :  { %2134 = vsyncpa [#allocation3], 1 }

</bundles_post_ra>
